<compile_context>
chip_gen: v7x
topology: tpu7x:2x2x1
jax: 0.10.0
libtpu: 0.0.40
codegen_flags: <defaults>
</compile_context>

<pallas_src>
import jax
import jax.numpy as jnp
from jax.experimental import pallas as pl
from jax.experimental.pallas import tpu as pltpu


def gated_abmil_kernel(x_ref,
                       wfe_ref, bfe_ref,
                       wa_ref, ba_ref,
                       wb_ref, bb_ref,
                       ww_ref, bw_ref,
                       wc_ref, bc_ref,
                       out_ref):
    BB, N, D = x_ref.shape
    H1 = wfe_ref.shape[1]

    # Flatten the bag block so every matmul sees BB*N rows (full-width MXU passes).
    x = x_ref[...].reshape(BB * N, D)                                  # bf16 (BB*N, D)

    # feature_extractor: Linear(D, H1) + ReLU (dropout is identity in eval)
    h = jnp.dot(x, wfe_ref[...], preferred_element_type=jnp.float32) + bfe_ref[...]
    h = jnp.maximum(h, 0.0)                                            # f32 (BB*N, H1)

    # gated attention branches (bf16 matmul operands, f32 accumulation / activations)
    h_bf = h.astype(jnp.bfloat16)
    a = jnp.tanh(
        jnp.dot(h_bf, wa_ref[...], preferred_element_type=jnp.float32) + ba_ref[...])
    g = jax.nn.sigmoid(
        jnp.dot(h_bf, wb_ref[...], preferred_element_type=jnp.float32) + bb_ref[...])
    gated = a * g                                                      # f32 (BB*N, H2)

    # attention logits on the MXU: (BB*N, H2) @ (H2, 1), one scalar per instance
    logits = jnp.dot(gated, ww_ref[...],
                     preferred_element_type=jnp.float32) + bw_ref[...]  # (BB*N, 1)
    logits = logits.reshape(BB, N, 1)                                  # per-bag, N on sublanes

    # softmax over the instance axis (dim=1 in the PyTorch module)
    m = jnp.max(logits, axis=1, keepdims=True)
    e = jnp.exp(logits - m)
    denom = jnp.sum(e, axis=1, keepdims=True)
    prob = e * pl.reciprocal(denom, approx=True)                       # (BB, N, 1)
    # TODO(synk): if N is ever padded to a sublane multiple, mask padded instances
    # with -inf logits before this softmax.

    # attention-weighted pooling of h on the MXU: contract over N per bag
    h3 = h.reshape(BB, N, H1)
    pooled = jnp.einsum('bnq,bnh->bqh', prob, h3,
                        preferred_element_type=jnp.float32)            # (BB, 1, H1)
    pooled = pooled.reshape(BB, H1)

    # classifier: Linear(H1, n_classes), kept in f32 (tiny)
    out = jnp.dot(pooled, wc_ref[...], preferred_element_type=jnp.float32) + bc_ref[...]
    out_ref[...] = out.astype(out_ref.dtype)                           # (BB, C)


def gated_abmil_forward(x, params, block_bags=8):
    """x: (B, N, D) float32.  params: dict of weights (stored as (in, out))."""
    B, N, D = x.shape
    H1 = params["w_fe"].shape[1]
    H2 = params["w_a"].shape[1]
    C = params["w_cls"].shape[1]

    # Batch several bags per grid step so every MXU matmul has BB*N rows.
    # BB is a multiple of 8 so the (BB, C) output block satisfies the (8, 128)
    # sublane constraint; pad the batch to a multiple of BB (zero bags are
    # harmless and sliced off below).
    BB = block_bags
    B_pad = pl.cdiv(B, BB) * BB
    if B_pad != B:
        x = jnp.pad(x, ((0, B_pad - B), (0, 0), (0, 0)))

    # bf16 operands for the big matmuls (halves DMA bytes, doubles MXU rate).
    x_bf = x.astype(jnp.bfloat16)
    w_fe = params["w_fe"].astype(jnp.bfloat16)
    w_a = params["w_a"].astype(jnp.bfloat16)
    w_b = params["w_b"].astype(jnp.bfloat16)

    # Weights/biases use constant index maps so they stay resident across steps.
    const = lambda shape: pl.BlockSpec(shape, lambda b: (0,) * len(shape))

    out = pl.pallas_call(
        gated_abmil_kernel,
        out_shape=jax.ShapeDtypeStruct((B_pad, C), jnp.float32),
        grid_spec=pltpu.PrefetchScalarGridSpec(
            num_scalar_prefetch=0,
            grid=(B_pad // BB,),
            in_specs=[
                pl.BlockSpec((BB, N, D), lambda b: (b, 0, 0)),   # x block
                const((D, H1)), const((1, H1)),                  # feature_extractor
                const((H1, H2)), const((1, H2)),                 # attention_a
                const((H1, H2)), const((1, H2)),                 # attention_b
                const((H2, 1)), const((1, 1)),                   # attention w
                const((H1, C)), const((1, C)),                   # classifier
            ],
            out_specs=pl.BlockSpec((BB, C), lambda b: (b, 0)),
        ),
        compiler_params=pltpu.CompilerParams(
            dimension_semantics=("parallel",)),
    )(x_bf,
      w_fe, params["b_fe"],
      w_a, params["b_a"],
      w_b, params["b_b"],
      params["w_w"], params["b_w"],
      params["w_cls"], params["b_cls"])
    return out[:B]                                                     # (B, C)


def reference_forward(x, p):
    h = jax.nn.relu(x @ p["w_fe"] + p["b_fe"][0])
    a = jnp.tanh(h @ p["w_a"] + p["b_a"][0])
    g = jax.nn.sigmoid(h @ p["w_b"] + p["b_b"][0])
    c = (a * g) @ p["w_w"] + p["b_w"][0, 0]          # (B, N, 1)
    prob = jax.nn.softmax(c, axis=1)
    pooled = jnp.sum(prob * h, axis=1)
    return pooled @ p["w_cls"] + p["b_cls"][0]


def init_params(key, D, H1, H2, C):
    ks = jax.random.split(key, 10)
    u = lambda k, shape, fan_in: jax.random.uniform(
        k, shape, jnp.float32, -1.0 / jnp.sqrt(fan_in), 1.0 / jnp.sqrt(fan_in))
    # Weights stored as (in, out) == transposed PyTorch nn.Linear weight.
    return {
        "w_fe": u(ks[0], (D, H1), D),   "b_fe": u(ks[1], (1, H1), D),
        "w_a":  u(ks[2], (H1, H2), H1), "b_a":  u(ks[3], (1, H2), H1),
        "w_b":  u(ks[4], (H1, H2), H1), "b_b":  u(ks[5], (1, H2), H1),
        "w_w":  u(ks[6], (H2, 1), H2),  "b_w":  u(ks[7], (1, 1), H2),
        "w_cls": u(ks[8], (H1, C), H1), "b_cls": u(ks[9], (1, C), H1),
    }


if __name__ == "__main__":
    # Small shapes consistent with the module: bags of instance embeddings.
    B, N, D = 12, 32, 256        # 12 bags (exercises padding), 32 instances, 256-dim
    H1, H2, C = 128, 128, 2      # hdim1, hdim2, n_classes
    BB = 8                       # bags per grid step -> 256-row matmuls, grid of 2

    key = jax.random.PRNGKey(0)
    kx, kp = jax.random.split(key)
    x = jax.random.normal(kx, (B, N, D), dtype=jnp.float32)
    params = init_params(kp, D, H1, H2, C)

    out = gated_abmil_forward(x, params, block_bags=BB)
    out = jax.block_until_ready(out)

    ref = reference_forward(x, params)
    assert out.shape == (B, C)
    # bf16 matmul operands in the kernel => loose tolerance vs the f32 reference.
    assert jnp.allclose(out, ref, atol=3e-2, rtol=3e-2), (out, ref)

    print("KERNEL_OK")
</pallas_src>

<mosaic_0001>
module attributes {stable_mosaic.version = 11 : i64} {
  func.func @gated_abmil_kernel(%arg0: i32, %arg1: memref<8x32x256xbf16, #tpu.memory_space<vmem>>, %arg2: memref<256x128xbf16, #tpu.memory_space<vmem>>, %arg3: memref<1x128xf32, #tpu.memory_space<vmem>>, %arg4: memref<128x128xbf16, #tpu.memory_space<vmem>>, %arg5: memref<1x128xf32, #tpu.memory_space<vmem>>, %arg6: memref<128x128xbf16, #tpu.memory_space<vmem>>, %arg7: memref<1x128xf32, #tpu.memory_space<vmem>>, %arg8: memref<128x1xf32, #tpu.memory_space<vmem>>, %arg9: memref<1x1xf32, #tpu.memory_space<vmem>>, %arg10: memref<128x2xf32, #tpu.memory_space<vmem>>, %arg11: memref<1x2xf32, #tpu.memory_space<vmem>>, %arg12: memref<8x2xf32, #tpu.memory_space<vmem>>) attributes {dimension_semantics = [#tpu.dimension_semantics<parallel>], iteration_bounds = array<i64: 2>, scalar_prefetch = 0 : i64, scratch_operands = 0 : i64, tpu.core_type = #tpu.core_type<tc>, window_params = [{transform_indices = @transform_0, window_bounds = array<i64: 8, 32, 256>}, {pipeline_mode = #tpu.pipeline_mode<synchronous>, transform_indices = @transform_1, window_bounds = array<i64: 256, 128>}, {pipeline_mode = #tpu.pipeline_mode<synchronous>, transform_indices = @transform_2, window_bounds = array<i64: 1, 128>}, {pipeline_mode = #tpu.pipeline_mode<synchronous>, transform_indices = @transform_3, window_bounds = array<i64: 128, 128>}, {pipeline_mode = #tpu.pipeline_mode<synchronous>, transform_indices = @transform_4, window_bounds = array<i64: 1, 128>}, {pipeline_mode = #tpu.pipeline_mode<synchronous>, transform_indices = @transform_5, window_bounds = array<i64: 128, 128>}, {pipeline_mode = #tpu.pipeline_mode<synchronous>, transform_indices = @transform_6, window_bounds = array<i64: 1, 128>}, {pipeline_mode = #tpu.pipeline_mode<synchronous>, transform_indices = @transform_7, window_bounds = array<i64: 128, 1>}, {pipeline_mode = #tpu.pipeline_mode<synchronous>, transform_indices = @transform_8, window_bounds = array<i64: 1, 1>}, {pipeline_mode = #tpu.pipeline_mode<synchronous>, transform_indices = @transform_9, window_bounds = array<i64: 128, 2>}, {pipeline_mode = #tpu.pipeline_mode<synchronous>, transform_indices = @transform_10, window_bounds = array<i64: 1, 2>}, {transform_indices = @transform_11, window_bounds = array<i64: 8, 2>}]} {
    %c0 = arith.constant 0 : index
    %c0_0 = arith.constant 0 : index
    %c0_1 = arith.constant 0 : index
    %0 = vector.load %arg1[%c0, %c0_0, %c0_1] : memref<8x32x256xbf16, #tpu.memory_space<vmem>>, vector<8x32x256xbf16>
    %1 = vector.shape_cast %0 : vector<8x32x256xbf16> to vector<256x256xbf16>
    %c0_2 = arith.constant 0 : index
    %c0_3 = arith.constant 0 : index
    %2 = vector.load %arg2[%c0_2, %c0_3] : memref<256x128xbf16, #tpu.memory_space<vmem>>, vector<256x128xbf16>
    %cst = arith.constant dense<0.000000e+00> : vector<256x128xf32>
    %3 = tpu.matmul %1, %2, %cst {dimension_numbers = #tpu.dot_dimension_numbers<[1], [0], [0], [1], [0, 0, 1, 1], [], []>} : vector<256x256xbf16>, vector<256x128xbf16>, vector<256x128xf32> -> vector<256x128xf32>
    %c0_4 = arith.constant 0 : index
    %c0_5 = arith.constant 0 : index
    %4 = vector.load %arg3[%c0_4, %c0_5] : memref<1x128xf32, #tpu.memory_space<vmem>>, vector<1x128xf32>
    %5 = vector.broadcast %4 : vector<1x128xf32> to vector<256x128xf32>
    %6 = arith.addf %3, %5 : vector<256x128xf32>
    %cst_6 = arith.constant 0.000000e+00 : f32
    %7 = vector.broadcast %cst_6 : f32 to vector<256x128xf32>
    %8 = arith.maximumf %6, %7 : vector<256x128xf32>
    %9 = arith.truncf %8 : vector<256x128xf32> to vector<256x128xbf16>
    %c0_7 = arith.constant 0 : index
    %c0_8 = arith.constant 0 : index
    %10 = vector.load %arg4[%c0_7, %c0_8] : memref<128x128xbf16, #tpu.memory_space<vmem>>, vector<128x128xbf16>
    %cst_9 = arith.constant dense<0.000000e+00> : vector<256x128xf32>
    %11 = tpu.matmul %9, %10, %cst_9 {dimension_numbers = #tpu.dot_dimension_numbers<[1], [0], [0], [1], [0, 0, 1, 1], [], []>} : vector<256x128xbf16>, vector<128x128xbf16>, vector<256x128xf32> -> vector<256x128xf32>
    %c0_10 = arith.constant 0 : index
    %c0_11 = arith.constant 0 : index
    %12 = vector.load %arg5[%c0_10, %c0_11] : memref<1x128xf32, #tpu.memory_space<vmem>>, vector<1x128xf32>
    %13 = vector.broadcast %12 : vector<1x128xf32> to vector<256x128xf32>
    %14 = arith.addf %11, %13 : vector<256x128xf32>
    %15 = math.tanh %14 : vector<256x128xf32>
    %c0_12 = arith.constant 0 : index
    %c0_13 = arith.constant 0 : index
    %16 = vector.load %arg6[%c0_12, %c0_13] : memref<128x128xbf16, #tpu.memory_space<vmem>>, vector<128x128xbf16>
    %cst_14 = arith.constant dense<0.000000e+00> : vector<256x128xf32>
    %17 = tpu.matmul %9, %16, %cst_14 {dimension_numbers = #tpu.dot_dimension_numbers<[1], [0], [0], [1], [0, 0, 1, 1], [], []>} : vector<256x128xbf16>, vector<128x128xbf16>, vector<256x128xf32> -> vector<256x128xf32>
    %c0_15 = arith.constant 0 : index
    %c0_16 = arith.constant 0 : index
    %18 = vector.load %arg7[%c0_15, %c0_16] : memref<1x128xf32, #tpu.memory_space<vmem>>, vector<1x128xf32>
    %19 = vector.broadcast %18 : vector<1x128xf32> to vector<256x128xf32>
    %20 = arith.addf %17, %19 : vector<256x128xf32>
    %21 = arith.negf %20 : vector<256x128xf32>
    %22 = math.exp %21 : vector<256x128xf32>
    %cst_17 = arith.constant 1.000000e+00 : f32
    %23 = vector.broadcast %cst_17 : f32 to vector<256x128xf32>
    %24 = arith.addf %23, %22 : vector<256x128xf32>
    %25 = arith.divf %23, %24 : vector<256x128xf32>
    %26 = arith.mulf %15, %25 : vector<256x128xf32>
    %c0_18 = arith.constant 0 : index
    %c0_19 = arith.constant 0 : index
    %27 = vector.load %arg8[%c0_18, %c0_19] : memref<128x1xf32, #tpu.memory_space<vmem>>, vector<128x1xf32>
    %cst_20 = arith.constant dense<0.000000e+00> : vector<256x1xf32>
    %28 = tpu.matmul %26, %27, %cst_20 {dimension_numbers = #tpu.dot_dimension_numbers<[1], [0], [0], [1], [0, 0, 1, 1], [], []>} : vector<256x128xf32>, vector<128x1xf32>, vector<256x1xf32> -> vector<256x1xf32>
    %c0_21 = arith.constant 0 : index
    %c0_22 = arith.constant 0 : index
    %29 = vector.load %arg9[%c0_21, %c0_22] : memref<1x1xf32, #tpu.memory_space<vmem>>, vector<1x1xf32>
    %30 = vector.broadcast %29 : vector<1x1xf32> to vector<256x1xf32>
    %31 = arith.addf %28, %30 : vector<256x1xf32>
    %32 = vector.shape_cast %31 : vector<256x1xf32> to vector<8x32x1xf32>
    %cst_23 = arith.constant dense<0xFF800000> : vector<8x1xf32>
    %33 = vector.multi_reduction <maximumf>, %32, %cst_23 [1] : vector<8x32x1xf32> to vector<8x1xf32>
    %34 = vector.shape_cast %33 : vector<8x1xf32> to vector<8x1x1xf32>
    %35 = vector.broadcast %34 : vector<8x1x1xf32> to vector<8x32x1xf32>
    %36 = arith.subf %32, %35 : vector<8x32x1xf32>
    %37 = math.exp %36 : vector<8x32x1xf32>
    %cst_24 = arith.constant dense<0.000000e+00> : vector<8x1xf32>
    %38 = vector.multi_reduction <add>, %37, %cst_24 [1] : vector<8x32x1xf32> to vector<8x1xf32>
    %39 = vector.shape_cast %38 : vector<8x1xf32> to vector<8x1x1xf32>
    %40 = tpu.reciprocal %39 {approx = true} : vector<8x1x1xf32> -> vector<8x1x1xf32>
    %41 = vector.broadcast %40 : vector<8x1x1xf32> to vector<8x32x1xf32>
    %42 = arith.mulf %37, %41 : vector<8x32x1xf32>
    %43 = vector.shape_cast %8 : vector<256x128xf32> to vector<8x32x128xf32>
    "tpu.trace_start"() <{level = 10 : i32, message = "bnq,bnh->bqh"}> : () -> ()
    %cst_25 = arith.constant dense<0.000000e+00> : vector<8x1x128xf32>
    %44 = tpu.matmul %42, %43, %cst_25 {dimension_numbers = #tpu.dot_dimension_numbers<[1], [1], [2], [2], [0, 0, 0, 2, 1, 2], [0], [0]>} : vector<8x32x1xf32>, vector<8x32x128xf32>, vector<8x1x128xf32> -> vector<8x1x128xf32>
    "tpu.trace_stop"() : () -> ()
    %45 = vector.shape_cast %44 : vector<8x1x128xf32> to vector<8x128xf32>
    %c0_26 = arith.constant 0 : index
    %c0_27 = arith.constant 0 : index
    %46 = vector.load %arg10[%c0_26, %c0_27] : memref<128x2xf32, #tpu.memory_space<vmem>>, vector<128x2xf32>
    %cst_28 = arith.constant dense<0.000000e+00> : vector<8x2xf32>
    %47 = tpu.matmul %45, %46, %cst_28 {dimension_numbers = #tpu.dot_dimension_numbers<[1], [0], [0], [1], [0, 0, 1, 1], [], []>} : vector<8x128xf32>, vector<128x2xf32>, vector<8x2xf32> -> vector<8x2xf32>
    %c0_29 = arith.constant 0 : index
    %c0_30 = arith.constant 0 : index
    %48 = vector.load %arg11[%c0_29, %c0_30] : memref<1x2xf32, #tpu.memory_space<vmem>>, vector<1x2xf32>
    %49 = vector.broadcast %48 : vector<1x2xf32> to vector<8x2xf32>
    %50 = arith.addf %47, %49 : vector<8x2xf32>
    %c0_31 = arith.constant 0 : index
    %c0_32 = arith.constant 0 : index
    %51 = vector.load %arg12[%c0_31, %c0_32] : memref<8x2xf32, #tpu.memory_space<vmem>>, vector<8x2xf32>
    tpu.vector_store %arg12[%c0_31, %c0_32], %50 {strides = array<i32>} : memref<8x2xf32, #tpu.memory_space<vmem>>, vector<8x2xf32>,
    return
  }
  func.func @transform_0(%arg0: i32) -> (i32, i32, i32) {
    %c0_i32 = arith.constant 0 : i32
    %c0_i32_0 = arith.constant 0 : i32
    %c0_i32_1 = arith.constant 0 : i32
    return %arg0, %c0_i32, %c0_i32_0 : i32, i32, i32
  }
  func.func @transform_1(%arg0: i32) -> (i32, i32) {
    %c0_i32 = arith.constant 0 : i32
    %c0_i32_0 = arith.constant 0 : i32
    %c0_i32_1 = arith.constant 0 : i32
    return %c0_i32, %c0_i32_0 : i32, i32
  }
  func.func @transform_2(%arg0: i32) -> (i32, i32) {
    %c0_i32 = arith.constant 0 : i32
    %c0_i32_0 = arith.constant 0 : i32
    %c0_i32_1 = arith.constant 0 : i32
    return %c0_i32, %c0_i32_0 : i32, i32
  }
  func.func @transform_3(%arg0: i32) -> (i32, i32) {
    %c0_i32 = arith.constant 0 : i32
    %c0_i32_0 = arith.constant 0 : i32
    %c0_i32_1 = arith.constant 0 : i32
    return %c0_i32, %c0_i32_0 : i32, i32
  }
  func.func @transform_4(%arg0: i32) -> (i32, i32) {
    %c0_i32 = arith.constant 0 : i32
    %c0_i32_0 = arith.constant 0 : i32
    %c0_i32_1 = arith.constant 0 : i32
    return %c0_i32, %c0_i32_0 : i32, i32
  }
  func.func @transform_5(%arg0: i32) -> (i32, i32) {
    %c0_i32 = arith.constant 0 : i32
    %c0_i32_0 = arith.constant 0 : i32
    %c0_i32_1 = arith.constant 0 : i32
    return %c0_i32, %c0_i32_0 : i32, i32
  }
  func.func @transform_6(%arg0: i32) -> (i32, i32) {
    %c0_i32 = arith.constant 0 : i32
    %c0_i32_0 = arith.constant 0 : i32
    %c0_i32_1 = arith.constant 0 : i32
    return %c0_i32, %c0_i32_0 : i32, i32
  }
  func.func @transform_7(%arg0: i32) -> (i32, i32) {
    %c0_i32 = arith.constant 0 : i32
    %c0_i32_0 = arith.constant 0 : i32
    %c0_i32_1 = arith.constant 0 : i32
    return %c0_i32, %c0_i32_0 : i32, i32
  }
  func.func @transform_8(%arg0: i32) -> (i32, i32) {
    %c0_i32 = arith.constant 0 : i32
    %c0_i32_0 = arith.constant 0 : i32
    %c0_i32_1 = arith.constant 0 : i32
    return %c0_i32, %c0_i32_0 : i32, i32
  }
  func.func @transform_9(%arg0: i32) -> (i32, i32) {
    %c0_i32 = arith.constant 0 : i32
    %c0_i32_0 = arith.constant 0 : i32
    %c0_i32_1 = arith.constant 0 : i32
    return %c0_i32, %c0_i32_0 : i32, i32
  }
  func.func @transform_10(%arg0: i32) -> (i32, i32) {
    %c0_i32 = arith.constant 0 : i32
    %c0_i32_0 = arith.constant 0 : i32
    %c0_i32_1 = arith.constant 0 : i32
    return %c0_i32, %c0_i32_0 : i32, i32
  }
  func.func @transform_11(%arg0: i32) -> (i32, i32) {
    %c0_i32 = arith.constant 0 : i32
    %c0_i32_0 = arith.constant 0 : i32
    return %arg0, %c0_i32 : i32, i32
  }
}

</mosaic_0001>

<bundles_post_ra>
// kernel: tpu_custom_call.1
= control target key start
LH: loop header
LB: loop body
LE: loop exit
PB: predicated region body
PF: predicated region fallthrough
CT: control target
= control target key end

     0   :  { %s5666_s0 = inlined_call_operand.hbm [shape: bf16[16,32,256], index: 0, kind: input, shape index: {}]   ;;  %s5667_s1 = inlined_call_operand.vmem [shape: bf16[256,128], index: 1, kind: input, shape index: {}]   ;;  %s5668_s2 = inlined_call_operand.vmem [shape: f32[1,128], index: 2, kind: input, shape index: {}]   ;;  %s5669_s3 = inlined_call_operand.vmem [shape: bf16[128,128], index: 3, kind: input, shape index: {}]   ;;  %s5670_s4 = inlined_call_operand.vmem [shape: f32[1,128], index: 4, kind: input, shape index: {}]   ;;  %s5671_s5 = inlined_call_operand.vmem [shape: bf16[128,128], index: 5, kind: input, shape index: {}]   ;;  %s5672_s6 = inlined_call_operand.vmem [shape: f32[1,128], index: 6, kind: input, shape index: {}]   ;;  %s5673_s7 = inlined_call_operand.vmem [shape: f32[128,1], index: 7, kind: input, shape index: {}]   ;;  %s5674_s8 = inlined_call_operand.<no memory space> [shape: f32[1,1], index: 8, kind: input, shape index: {}]   ;;  %s5675_s9 = inlined_call_operand.vmem [shape: f32[128,2], index: 9, kind: input, shape index: {}]   ;;  %s5676_s10 = inlined_call_operand.vmem [shape: f32[1,2], index: 10, kind: input, shape index: {}]   ;;  %s5677_s11 = inlined_call_operand.vmem [shape: f32[16,2], index: 11, kind: output, shape index: {}]  }
   0x1   :  { %v16_v0 = vstv %s5674_s8 }
   0x2   :  { %17 = vst [vmem:[#allocation2] sm:$0x1] %v16_v0 }
   0x3   :  { %18 = vsyncpa [#allocation4], 0 }
   0x4   :  { %20 = vsyncpa [#allocation4 + $0x1], 0  ;;  %s4612_s19 = smov 0   ;;  %s4614_s20 = smov 0  }
   0x5   :  { %s4616_s21 = smov 0   ;;  %s4618_s22 = smov 0  }
   0x6 LB: > { %s4631_s8 = sadd.s32 4294967295, %s4541_s22   ;;  %s4634_s23 = sadd.s32 1, %s4541_s22   ;;  %s4541_s22 = sphi %s4618_s22, %s5696_s22   ;;  %s4537_s21 = sphi %s4616_s21, %s5695_s21   ;;  %s4533_s20 = sphi %s4614_s20, %s5694_s20   ;;  %s4529_s19 = sphi %s4612_s19, %s5693_s19  }
   0x7   : > { %s30_s24 = ssub.s32 %s4541_s22, %s4634_s23  ;;  %s33_s25 = sadd.s32 1, %s4537_s21 }
   0x8   : > { %p31_p0 = scmp.eq.s32.totalorder %s30_s24, 0  ;;  %p40_p1 = scmp.ne.s32.totalorder %s4537_s21, %s4533_s20 }
   0x9   : > { %p41_p2 = scmp.eq.s32.totalorder %s4541_s22, 0  ;;  %p46_p3 = scmp.ne.s32.totalorder %s4533_s20, %s4529_s19 }
   0xa   : > { %s4644_s26 = scalar_select %p31_p0, %s4537_s21, %s33_s25  }
   0xb   : > { %p42_p4 = por %p41_p2, %p40_p1  ;;  %p47_p5 = scmp.eq.s32.totalorder %s4631_s8, 0 }
   0xc   : > { %p4087_p6 = scmp.lt.s32.totalorder %s4541_s22, 2  ;;  %s336_s28 = sand.u32 1, %s4537_s21  }
   0xd   : > { %p4648_p7 = por %p47_p5, %p46_p3  ;;  %s3293_s29 = sshll.u32 %s336_s28, 8 }
   0xe   : > { %s3412_s30 = sshll.u32 %s4541_s22, 12  ;;  %s340_s15 = scalar_lea.vmem [#allocation3], %s3293_s29 }
   0xf   : > { %s4657_s14 = scalar_lea.hbm %s5666_s0, %s3412_s30  ;;  %s348_s16 = sshll.u32 %s340_s15, 4  ;;  %s4659_s16 = int_to_ptr.vmem [resolvable:$true] %s348_s16 }
  0x10   : > { %p4661_p8 = pnand %p4087_p6, %p42_p4  ;;  %s4666_s18 = scalar_lea.sflag [#allocation4], %s336_s28 }
  0x11   : > { %s4477_s19 = scalar_lea.hbm %s4657_s14, 4096  ;;  %s4482_s29 = scalar_lea.hbm %s5666_s0, 8192 }
  0x12   : > { %p4478_p10 = scmp.ne.s32.totalorder %s4657_s14, %s4477_s19  ;;  %p4479_p11 = pneg %p4661_p8 }
  0x13   : > { %p4483_p0 = scmp.lt.u32.totalorder %s4657_s14, %s5666_s0  ;;  %p4484_p1 = scmp.lt.u32.totalorder %s4482_s29, %s4477_s19 }
  0x14   : > { %p4480_p12 = pnand %p4479_p11, %p4478_p10  ;;  %p4486_p3 = scmp.lt.u32.totalorder %s4477_s19, %s4657_s14 }
  0x15   : > { %p4485_p2 = por %p4484_p1, %p4483_p0 }
  0x16   : > { %p4481_p13 = pneg %p4480_p12 }
  0x17   : > { %p4487_p4 = por %p4486_p3, %p4485_p2 }
  0x19   : > { %p4488_p5 = pnand %p4487_p4, %p4481_p13 }
  0x1b   : > { %4491 = shalt.err (!%p4488_p5)
}
  0x1c   : > { %s4492_s28 = scalar_lea.vmem %s4659_s16, 4096  ;;  %s4543_s13 = smov [#allocation3]  }
  0x1d   : > { %p4493_p6 = scmp.ne.s32.totalorder %s4659_s16, %s4492_s28  ;;  %s4497_s15 = sshll.u32 %s4543_s13, 4  ;;  %s4498_s15 = int_to_ptr.vmem [resolvable:$false] %s4497_s15 }
  0x1e   : > { %s4499_s24 = scalar_lea.vmem %s4498_s15, 8192  ;;  %p4500_p9 = scmp.lt.s32.totalorder %s4659_s16, %s4498_s15 }
  0x1f   : > { %p4495_p10 = pnand %p4493_p6, %p4479_p11  ;;  %p4501_p0 = scmp.lt.s32.totalorder %s4499_s24, %s4492_s28 }
  0x21   : > { %p4496_p12 = pneg %p4495_p10  ;;  %p4502_p1 = por %p4501_p0, %p4500_p9 }
  0x23   : > { %p4503_p2 = pnand %p4502_p1, %p4496_p12 }
  0x25   : > { %4506 = shalt.err (!%p4503_p2)
}
  0x26   : > { %s4544_s19 = smov 128   ;;  %s4545_s25 = smov 8  }
  0x27   : > { %4086 = dma.hbm_to_vmem [thread:$0]  (!%p4661_p8), %s4657_s14, 4096, %s4659_s16, %s4666_s18, %s4544_s19, %s4544_s19, %s4545_s25  }
  0x28   : > { %p356_p11 = scmp.lt.s32.totalorder %s4541_s22, 3  ;;  %p5686_p13 = scmp.ge.s32.totalorder %s4541_s22, 1 }
  0x2a   : > { %p357_p3 = pnand %p5686_p13, %p356_p11 }
  0x2c   : > { %360 = sbr.rel (%p357_p3) target bundleno = 1604 (0x644), region = 64 }
  0x33   : > { %s362_s29 = sand.u32 1, %s4533_s20  }
  0x34   : > { %s3298_s30 = sshll.u32 %s362_s29, 8  ;;  %s363_s12 = scalar_lea.sflag [#allocation4], %s362_s29 }
  0x35   : > { %s4698_s28 = scalar_lea.vmem [#allocation3], %s3298_s30 }
  0x36   : > { %4524 = dma.done.wait (%p4648_p7), %s363_s12, 4096  }
  0x37   : > { %4526 = vsyncadd (%p4648_p7), %s363_s12, 4294963200  ;;  %v4125_v1 = vld [vmem:[%s5667_s1 + $0x40] sm:$0xff]   ;;  %v4127_v3 = vld [vmem:[%s5667_s1 + $0x48] sm:$0xff]   ;;  %vm1914_vm0 = vcmask 7168   ;;  %vm4547_vm1 = vmmov 0   ;;  %vm2291_vm2 = vcmask 261120  }
  0x38   : > { %v4126_v2 = vld [vmem:[%s5667_s1] sm:$0xff]   ;;  %3413 = vmatprep.subr.bf16.mxu0 %v4125_v1  ;;  %v4128_v4 = vld [vmem:[%s5667_s1 + $0x8] sm:$0xff]   ;;  %v4129_v5 = vld [vmem:[%s5667_s1 + $0x50] sm:$0xff]   ;;  %vm3132_vm3 = vcmask 1041409   ;;  %vm3135_vm4 = vcmask 1042434   ;;  %vm3138_vm5 = vcmask 1043459  }
  0x39   : > { %3414 = vmatpush3.bf16.msra.mxu0 %v4126_v2  ;;  %v4130_v6 = vld [vmem:[%s5667_s1 + $0x10] sm:$0xff]   ;;  %v4131_v7 = vld [vmem:[%s5667_s1 + $0x58] sm:$0xff]   ;;  %v4133_v9 = vld [vmem:[%s5667_s1 + $0x60] sm:$0xff]   ;;  %vm3141_vm6 = vcmask 1044484   ;;  %vm3144_vm7 = vcmask 1045509   ;;  %vm3147_vm8 = vcmask 1046534  }
  0x3a   : > { %3415 = vmatprep.subr.bf16.mxu0 %v4127_v3  ;;  %v4132_v8 = vld [vmem:[%s5667_s1 + $0x18] sm:$0xff]   ;;  %v4134_v10 = vld [vmem:[%s5667_s1 + $0x20] sm:$0xff]   ;;  %v4135_v11 = vld [vmem:[%s5667_s1 + $0x68] sm:$0xff]   ;;  %vm3150_vm9 = vcmask 1047559   ;;  %p405_p7 = scmp.lt.s32.totalorder %s4631_s8, 1  ;;  %vm3223_vm10 = vcmask 15360  }
  0x3b   : > { %v4143_v12 = vld [vmem:[%s4698_s28 + $0x4] ss:$8 sps:$4 sm:$0xff]   ;;  %v4139_v16 = vld [vmem:[%s5667_s1 + $0x78] sm:$0xff]   ;;  %v4141_v18 = vld [vmem:[%s4698_s28] ss:$8 sps:$4 sm:$0xff]  }
  0x3c   : > { %v4136_v13 = vld [vmem:[%s5667_s1 + $0x28] sm:$0xff]   ;;  %769 = vmatprep.mubr.bf16.mxu0 %v4143_v12  ;;  %v4137_v14 = vld [vmem:[%s5667_s1 + $0x70] sm:$0xff]   ;;  %v4140_v17 = vld [vmem:[%s5667_s1 + $0x38] sm:$0xff]   ;;  %s5698_s8 = smov (!%p405_p7, %s4631_s8), 1 }
  0x3d   : > { %3416 = vmatpush3.bf16.msra.mxu0 %v4128_v4  ;;  %v4138_v15 = vld [vmem:[%s5667_s1 + $0x30] sm:$0xff]   ;;  %v4189_v22 = vld [vmem:[%s5669_s3] sm:$0xff]   ;;  %v4190_v23 = vld [vmem:[%s5669_s3 + $0x8] sm:$0xff]   ;;  %s3299_s14 = sshll.u32 %s5698_s8, 3 }
  0x3e   : > { %3417 = vmatprep.subr.bf16.mxu0 %v4129_v5  ;;  %v4144_v19 = vld [vmem:[%s4698_s28 + $0x14] ss:$8 sps:$4 sm:$0xff]   ;;  %v4146_v20 = vld [vmem:[%s4698_s28 + $0x10] ss:$8 sps:$4 sm:$0xff]   ;;  %v4147_v21 = vld [vmem:[%s4698_s28 + $0x24] ss:$8 sps:$4 sm:$0xff]   ;;  %3678 = vmatprep.subr.bf16.mxu1 %v4189_v22  ;;  %s408_s24 = scalar_lea.vmem %s5677_s11, %s3299_s14 }
  0x3f   : > { %v4191_v24 = vld [vmem:[%s5669_s3 + $0x10] sm:$0xff]   ;;  %3679 = vmatpush3.bf16.msra.mxu1 %v4189_v22  ;;  %v4149_v25 = vld [vmem:[%s4698_s28 + $0x20] ss:$8 sps:$4 sm:$0xff]   ;;  %v4192_v43 = vld [vmem:[%s5669_s3 + $0x18] sm:$0xff]  }
  0x40   : > { %3680 = vmatprep.subr.bf16.mxu1 %v4190_v23  ;;  %v4150_v26 = vld [vmem:[%s4698_s28 + $0x34] ss:$8 sps:$4 sm:$0xff]   ;;  %v4152_v27 = vld [vmem:[%s4698_s28 + $0x30] ss:$8 sps:$4 sm:$0xff]   ;;  %v4153_v28 = vld [vmem:[%s4698_s28 + $0x44] ss:$8 sps:$4 sm:$0xff]  }
  0x41   : > { %3418 = vmatpush3.bf16.msra.mxu0 %v4130_v6  ;;  %v4155_v29 = vld [vmem:[%s4698_s28 + $0x40] ss:$8 sps:$4 sm:$0xff]   ;;  %v4156_v30 = vld [vmem:[%s4698_s28 + $0x54] ss:$8 sps:$4 sm:$0xff]   ;;  %v4158_v31 = vld [vmem:[%s4698_s28 + $0x50] ss:$8 sps:$4 sm:$0xff]  }
  0x42   : > { %3419 = vmatprep.subr.bf16.mxu0 %v4131_v7  ;;  %v4159_v32 = vld [vmem:[%s4698_s28 + $0x64] ss:$8 sps:$4 sm:$0xff]   ;;  %v4161_v33 = vld [vmem:[%s4698_s28 + $0x60] ss:$8 sps:$4 sm:$0xff]   ;;  %v4162_v34 = vld [vmem:[%s4698_s28 + $0x74] ss:$8 sps:$4 sm:$0xff]  }
  0x43   : > { %3681 = vmatpush3.bf16.msra.mxu1 %v4190_v23  ;;  %v4164_v35 = vld [vmem:[%s4698_s28 + $0x70] ss:$8 sps:$4 sm:$0xff]   ;;  %v4165_v36 = vld [vmem:[%s4698_s28 + $0x84] ss:$8 sps:$4 sm:$0xff]   ;;  %v4167_v37 = vld [vmem:[%s4698_s28 + $0x80] ss:$8 sps:$4 sm:$0xff]  }
  0x44   : > { %3682 = vmatprep.subr.bf16.mxu1 %v4191_v24  ;;  %v4168_v38 = vld [vmem:[%s4698_s28 + $0x94] ss:$8 sps:$4 sm:$0xff]   ;;  %v4170_v39 = vld [vmem:[%s4698_s28 + $0x90] ss:$8 sps:$4 sm:$0xff]   ;;  %v4171_v40 = vld [vmem:[%s4698_s28 + $0xa4] ss:$8 sps:$4 sm:$0xff]  }
  0x45   : > { %3420 = vmatpush3.bf16.msra.mxu0 %v4132_v8  ;;  %v4173_v41 = vld [vmem:[%s4698_s28 + $0xa0] ss:$8 sps:$4 sm:$0xff]   ;;  %v4174_v42 = vld [vmem:[%s4698_s28 + $0xb4] ss:$8 sps:$4 sm:$0xff]   ;;  %v4176_v44 = vld [vmem:[%s4698_s28 + $0xb0] ss:$8 sps:$4 sm:$0xff]  }
  0x46   : > { %3421 = vmatprep.subr.bf16.mxu0 %v4133_v9  ;;  %v4177_v45 = vld [vmem:[%s4698_s28 + $0xc4] ss:$8 sps:$4 sm:$0xff]   ;;  %v4179_v48 = vld [vmem:[%s4698_s28 + $0xc0] ss:$8 sps:$4 sm:$0xff]   ;;  %v4180_v49 = vld [vmem:[%s4698_s28 + $0xd4] ss:$8 sps:$4 sm:$0xff]  }
  0x47   : > { %3683 = vmatpush3.bf16.msra.mxu1 %v4191_v24  ;;  %v4193_v46 = vld [vmem:[%s5669_s3 + $0x20] sm:$0xff]   ;;  %v4194_v47 = vld [vmem:[%s5669_s3 + $0x28] sm:$0xff]   ;;  %v4195_v50 = vld [vmem:[%s5669_s3 + $0x30] sm:$0xff]  }
  0x48   : > { %3684 = vmatprep.subr.bf16.mxu1 %v4192_v43  ;;  %v4196_v51 = vld [vmem:[%s5669_s3 + $0x38] sm:$0xff]   ;;  %v4183_v53 = vld [vmem:[%s4698_s28 + $0xe4] ss:$8 sps:$4 sm:$0xff]   ;;  %v4185_v54 = vld [vmem:[%s4698_s28 + $0xe0] ss:$8 sps:$4 sm:$0xff]  }
  0x49   : > { %3422 = vmatpush3.bf16.msra.mxu0 %v4134_v10  ;;  %v4182_v52 = vld [vmem:[%s4698_s28 + $0xd0] ss:$8 sps:$4 sm:$0xff]   ;;  %v4186_v55 = vld [vmem:[%s4698_s28 + $0xf4] ss:$8 sps:$4 sm:$0xff]  }
  0x4a   : > { %3423 = vmatprep.subr.bf16.mxu0 %v4135_v11  ;;  %v4188_v56 = vld [vmem:[%s4698_s28 + $0xf0] ss:$8 sps:$4 sm:$0xff]   ;;  %v4197_v57 = vld [vmem:[%s5671_s5] sm:$0xff]  }
  0x4b   : > { %3685 = vmatpush3.bf16.msra.mxu1 %v4192_v43  ;;  %v4814_v59 = vld [vmem:[%s5668_s2] ss:$0 sm:$0xff] }
  0x4c   : > { %3686 = vmatprep.subr.bf16.mxu1 %v4193_v46 }
  0x4d   : > { %3424 = vmatpush3.bf16.msra.mxu0 %v4136_v13 }
  0x4e   : > { %3425 = vmatprep.subr.bf16.mxu0 %v4137_v14 }
  0x4f   : > { %3687 = vmatpush3.bf16.msra.mxu1 %v4193_v46 }
  0x50   : > { %3688 = vmatprep.subr.bf16.mxu1 %v4194_v47 }
  0x51   : > { %3426 = vmatpush3.bf16.msra.mxu0 %v4138_v15 }
  0x52   : > { %3427 = vmatprep.subr.bf16.mxu0 %v4139_v16 }
  0x53   : > { %3689 = vmatpush3.bf16.msra.mxu1 %v4194_v47  ;;  %v4202_v47 = vld [vmem:[%s5671_s5 + $0x28] sm:$0xff]  }
  0x54   : > { %3690 = vmatprep.subr.bf16.mxu1 %v4195_v50 }
  0x55   : > { %3428 = vmatpush3.bf16.msra.mxu0 %v4140_v17 }
  0x57   : > { %3691 = vmatpush3.bf16.msra.mxu1 %v4195_v50 }
  0x58   : > { %770 = vmatmul.mubr.bf16.vlgmr.msra.gmra.mrb[0].mxu0 %v4141_v18  ;;  %3692 = vmatprep.subr.bf16.mxu1 %v4196_v51 }
  0x59   : > { %777 = vmatprep.mubr.bf16.mxu0 %v4144_v19 }
  0x5b   : > { %3693 = vmatpush3.bf16.msra.mxu1 %v4196_v51 }
  0x5c   : > { %3726 = vmatprep.subr.bf16.mxu1 %v4197_v57 }
  0x60   : > { %778 = vmatmul.mubr.bf16.gmra.mrb[4].mxu0 %v4146_v20 }
  0x61   : > { %785 = vmatprep.mubr.bf16.mxu0 %v4147_v21  ;;  %v4198_v21 = vld [vmem:[%s5671_s5 + $0x8] sm:$0xff]  }
  0x68   : > { %786 = vmatmul.mubr.bf16.gmra.mrb[8].mxu0 %v4149_v25 }
  0x69   : > { %793 = vmatprep.mubr.bf16.mxu0 %v4150_v26  ;;  %v4199_v26 = vld [vmem:[%s5671_s5 + $0x10] sm:$0xff]  }
  0x70   : > { %794 = vmatmul.mubr.bf16.gmra.mrb[12].mxu0 %v4152_v27 }
  0x71   : > { %801 = vmatprep.mubr.bf16.mxu0 %v4153_v28 }
  0x78   : > { %802 = vmatmul.mubr.bf16.gmra.mrb[16].mxu0 %v4155_v29 }
  0x79   : > { %809 = vmatprep.mubr.bf16.mxu0 %v4156_v30 }
  0x80   : > { %810 = vmatmul.mubr.bf16.gmra.mrb[20].mxu0 %v4158_v31 }
  0x81   : > { %817 = vmatprep.mubr.bf16.mxu0 %v4159_v32 }
  0x88   : > { %818 = vmatmul.mubr.bf16.gmra.mrb[24].mxu0 %v4161_v33 }
  0x89   : > { %825 = vmatprep.mubr.bf16.mxu0 %v4162_v34  ;;  %v4200_v34 = vld [vmem:[%s5671_s5 + $0x18] sm:$0xff]  }
  0x90   : > { %826 = vmatmul.mubr.bf16.gmra.mrb[28].mxu0 %v4164_v35 }
  0x91   : > { %833 = vmatprep.mubr.bf16.mxu0 %v4165_v36 }
  0x98   : > { %834 = vmatmul.mubr.bf16.gmra.mrb[32].mxu0 %v4167_v37 }
  0x99   : > { %841 = vmatprep.mubr.bf16.mxu0 %v4168_v38 }
  0xa0   : > { %842 = vmatmul.mubr.bf16.gmra.mrb[36].mxu0 %v4170_v39  ;;  %v4201_v39 = vld [vmem:[%s5671_s5 + $0x20] sm:$0xff]  }
  0xa1   : > { %849 = vmatprep.mubr.bf16.mxu0 %v4171_v40 }
  0xa8   : > { %850 = vmatmul.mubr.bf16.gmra.mrb[40].mxu0 %v4173_v41 }
  0xa9   : > { %857 = vmatprep.mubr.bf16.mxu0 %v4174_v42 }
  0xb0   : > { %858 = vmatmul.mubr.bf16.gmra.mrb[44].mxu0 %v4176_v44 }
  0xb1   : > { %865 = vmatprep.mubr.bf16.mxu0 %v4177_v45 }
  0xb8   : > { %866 = vmatmul.mubr.bf16.gmra.mrb[48].mxu0 %v4179_v48 }
  0xb9   : > { %873 = vmatprep.mubr.bf16.mxu0 %v4180_v49 }
  0xc0   : > { %874 = vmatmul.mubr.bf16.gmra.mrb[52].mxu0 %v4182_v52  ;;  %v4203_v52 = vld [vmem:[%s5671_s5 + $0x30] sm:$0xff]  }
  0xc1   : > { %881 = vmatprep.mubr.bf16.mxu0 %v4183_v53 }
  0xc8   : > { %882 = vmatmul.mubr.bf16.gmra.mrb[56].mxu0 %v4185_v54 }
  0xc9   : > { %889 = vmatprep.mubr.bf16.mxu0 %v4186_v55 }
  0xd0   : > { %890 = vmatmul.mubr.bf16.gmra.mrb[60].mxu0 %v4188_v56 }
 0x12b   : > { %v3429_v58 = vpop.f32.mrb[0].mxu0 }
 0x12c   : > { %v3430_v60 = vpop.f32.mrb[1].mxu0 }
 0x12d   : > { %v3431_v61 = vadd.f32 %v3430_v60, %v3429_v58  ;;  %v3432_v62 = vpop.f32.mrb[2].mxu0 }
 0x12e   : > { %v3433_v63 = vpop.f32.mrb[3].mxu0 }
 0x12f   : > { %v772_v0 = vadd.f32 %v3431_v61, %v4814_v59  ;;  %v3434_v1 = vadd.f32 %v3433_v63, %v3432_v62  ;;  %v4204_v61 = vld [vmem:[%s5671_s5 + $0x38] sm:$0xff]  }
 0x131   : > { %v775_v2 = vadd.f32 %v3434_v1, %v4814_v59  ;;  %v898_v3 = vmax.f32 %v772_v0, 0.0 }
 0x133   : > { %v899_v4 = vmax.f32 %v775_v2, 0.0  ;;  %v3435_v5 = vpop.f32.mrb[4].mxu0 }
 0x134   : > { %v3436_v6 = vpop.f32.mrb[5].mxu0 }
 0x135   : > { %v3437_v7 = vadd.f32 %v3436_v6, %v3435_v5  ;;  %v3438_v8 = vpop.f32.mrb[6].mxu0  ;;  %v4818_v9 = vpack.c.bf16 %v899_v4, %v898_v3 }
 0x136   : > { %v3439_v10 = vpop.f32.mrb[7].mxu0 }
 0x137   : > { %v780_v11 = vadd.f32 %v3437_v7, %v4814_v59  ;;  %v3440_v12 = vadd.f32 %v3439_v10, %v3438_v8  ;;  %3694 = vmatprep.mubr.bf16.mxu1 %v4818_v9  ;;  %v5678_v10 = vmov 0.0|0.0  }
 0x139   : > { %v783_v13 = vadd.f32 %v3440_v12, %v4814_v59  ;;  %v900_v14 = vmax.f32 %v780_v11, 0.0 }
 0x13b   : > { %v901_v15 = vmax.f32 %v783_v13, 0.0  ;;  %v3441_v16 = vpop.f32.mrb[8].mxu0 }
 0x13c   : > { %v3442_v17 = vpop.f32.mrb[9].mxu0 }
 0x13d   : > { %v3443_v18 = vadd.f32 %v3442_v17, %v3441_v16  ;;  %v3444_v19 = vpop.f32.mrb[10].mxu0  ;;  %v4823_v20 = vpack.c.bf16 %v901_v15, %v900_v14 }
 0x13e   : > { %v3445_v22 = vpop.f32.mrb[11].mxu0 }
 0x13f   : > { %v788_v23 = vadd.f32 %v3443_v18, %v4814_v59  ;;  %v3446_v24 = vadd.f32 %v3445_v22, %v3444_v19  ;;  %3695 = vmatmul.mubr.bf16.vlgmr.msra.gmra.mrb[0].mxu1 %v4823_v20 }
 0x140   : > { %3727 = vmatpush3.bf16.msra.mxu1 %v4197_v57 }
 0x141   : > { %v791_v25 = vadd.f32 %v3446_v24, %v4814_v59  ;;  %3728 = vmatprep.subr.bf16.mxu1 %v4198_v21  ;;  %v902_v27 = vmax.f32 %v788_v23, 0.0 }
 0x143   : > { %v903_v28 = vmax.f32 %v791_v25, 0.0  ;;  %v3447_v29 = vpop.f32.mrb[12].mxu0 }
 0x144   : > { %v3448_v30 = vpop.f32.mrb[13].mxu0  ;;  %3729 = vmatpush3.bf16.msra.mxu1 %v4198_v21 }
 0x145   : > { %v3449_v31 = vadd.f32 %v3448_v30, %v3447_v29  ;;  %v3450_v32 = vpop.f32.mrb[14].mxu0  ;;  %v4834_v33 = vpack.c.bf16 %v903_v28, %v902_v27  ;;  %3730 = vmatprep.subr.bf16.mxu1 %v4199_v26 }
 0x146   : > { %v3451_v35 = vpop.f32.mrb[15].mxu0 }
 0x147   : > { %v796_v36 = vadd.f32 %v3449_v31, %v4814_v59  ;;  %v3452_v37 = vadd.f32 %v3451_v35, %v3450_v32  ;;  %3698 = vmatprep.mubr.bf16.mxu1 %v4834_v33 }
 0x148   : > { %3731 = vmatpush3.bf16.msra.mxu1 %v4199_v26 }
 0x149   : > { %v799_v38 = vadd.f32 %v3452_v37, %v4814_v59  ;;  %3732 = vmatprep.subr.bf16.mxu1 %v4200_v34  ;;  %v904_v40 = vmax.f32 %v796_v36, 0.0 }
 0x14b   : > { %v905_v41 = vmax.f32 %v799_v38, 0.0  ;;  %v3453_v42 = vpop.f32.mrb[16].mxu0 }
 0x14c   : > { %v3454_v43 = vpop.f32.mrb[17].mxu0  ;;  %3733 = vmatpush3.bf16.msra.mxu1 %v4200_v34 }
 0x14d   : > { %v3455_v44 = vadd.f32 %v3454_v43, %v3453_v42  ;;  %v3456_v45 = vpop.f32.mrb[18].mxu0  ;;  %v4845_v46 = vpack.c.bf16 %v905_v41, %v904_v40  ;;  %3734 = vmatprep.subr.bf16.mxu1 %v4201_v39 }
 0x14e   : > { %v3457_v48 = vpop.f32.mrb[19].mxu0 }
 0x14f   : > { %v804_v49 = vadd.f32 %v3455_v44, %v4814_v59  ;;  %v3458_v50 = vadd.f32 %v3457_v48, %v3456_v45  ;;  %3699 = vmatmul.mubr.bf16.gmra.mrb[4].mxu1 %v4845_v46 }
 0x150   : > { %3735 = vmatpush3.bf16.msra.mxu1 %v4201_v39 }
 0x151   : > { %v807_v51 = vadd.f32 %v3458_v50, %v4814_v59  ;;  %3736 = vmatprep.subr.bf16.mxu1 %v4202_v47  ;;  %v906_v53 = vmax.f32 %v804_v49, 0.0 }
 0x153   : > { %v907_v54 = vmax.f32 %v807_v51, 0.0  ;;  %v3459_v55 = vpop.f32.mrb[20].mxu0 }
 0x154   : > { %v3460_v56 = vpop.f32.mrb[21].mxu0  ;;  %3737 = vmatpush3.bf16.msra.mxu1 %v4202_v47 }
 0x155   : > { %v3461_v57 = vadd.f32 %v3460_v56, %v3459_v55  ;;  %v3462_v58 = vpop.f32.mrb[22].mxu0  ;;  %v4856_v60 = vpack.c.bf16 %v907_v54, %v906_v53  ;;  %3738 = vmatprep.subr.bf16.mxu1 %v4203_v52 }
 0x156   : > { %v3463_v62 = vpop.f32.mrb[23].mxu0 }
 0x157   : > { %v812_v63 = vadd.f32 %v3461_v57, %v4814_v59  ;;  %v3464_v0 = vadd.f32 %v3463_v62, %v3462_v58  ;;  %3702 = vmatprep.mubr.bf16.mxu1 %v4856_v60 }
 0x158   : > { %3739 = vmatpush3.bf16.msra.mxu1 %v4203_v52 }
 0x159   : > { %v815_v1 = vadd.f32 %v3464_v0, %v4814_v59  ;;  %3740 = vmatprep.subr.bf16.mxu1 %v4204_v61  ;;  %v908_v2 = vmax.f32 %v812_v63, 0.0 }
 0x15b   : > { %v909_v3 = vmax.f32 %v815_v1, 0.0  ;;  %v3465_v4 = vpop.f32.mrb[24].mxu0 }
 0x15c   : > { %v3466_v5 = vpop.f32.mrb[25].mxu0  ;;  %3741 = vmatpush3.bf16.msra.mxu1 %v4204_v61 }
 0x15d   : > { %v3467_v6 = vadd.f32 %v3466_v5, %v3465_v4  ;;  %v3468_v7 = vpop.f32.mrb[26].mxu0  ;;  %v4864_v8 = vpack.c.bf16 %v909_v3, %v908_v2  ;;  %4009 = vmatprep.subr.bf16.mxu1 %v5678_v10 }
 0x15e   : > { %v3469_v11 = vpop.f32.mrb[27].mxu0 }
 0x15f   : > { %v820_v12 = vadd.f32 %v3467_v6, %v4814_v59  ;;  %v3470_v13 = vadd.f32 %v3469_v11, %v3468_v7  ;;  %3703 = vmatmul.mubr.bf16.gmra.mrb[8].mxu1 %v4864_v8 }
 0x161   : > { %v823_v14 = vadd.f32 %v3470_v13, %v4814_v59  ;;  %v910_v15 = vmax.f32 %v820_v12, 0.0 }
 0x163   : > { %v911_v16 = vmax.f32 %v823_v14, 0.0  ;;  %v3471_v17 = vpop.f32.mrb[28].mxu0 }
 0x164   : > { %v3472_v18 = vpop.f32.mrb[29].mxu0 }
 0x165   : > { %v3473_v19 = vadd.f32 %v3472_v18, %v3471_v17  ;;  %v3474_v21 = vpop.f32.mrb[30].mxu0  ;;  %v4870_v22 = vpack.c.bf16 %v911_v16, %v910_v15 }
 0x166   : > { %v3475_v23 = vpop.f32.mrb[31].mxu0 }
 0x167   : > { %v828_v24 = vadd.f32 %v3473_v19, %v4814_v59  ;;  %v3476_v25 = vadd.f32 %v3475_v23, %v3474_v21  ;;  %3706 = vmatprep.mubr.bf16.mxu1 %v4870_v22 }
 0x169   : > { %v831_v26 = vadd.f32 %v3476_v25, %v4814_v59  ;;  %v912_v27 = vmax.f32 %v828_v24, 0.0 }
 0x16b   : > { %v913_v28 = vmax.f32 %v831_v26, 0.0  ;;  %v3477_v29 = vpop.f32.mrb[32].mxu0 }
 0x16c   : > { %v3478_v30 = vpop.f32.mrb[33].mxu0 }
 0x16d   : > { %v3479_v31 = vadd.f32 %v3478_v30, %v3477_v29  ;;  %v3480_v32 = vpop.f32.mrb[34].mxu0  ;;  %v4875_v34 = vpack.c.bf16 %v913_v28, %v912_v27 }
 0x16e   : > { %v3481_v35 = vpop.f32.mrb[35].mxu0 }
 0x16f   : > { %v836_v36 = vadd.f32 %v3479_v31, %v4814_v59  ;;  %v3482_v37 = vadd.f32 %v3481_v35, %v3480_v32  ;;  %3707 = vmatmul.mubr.bf16.gmra.mrb[12].mxu1 %v4875_v34 }
 0x171   : > { %v839_v38 = vadd.f32 %v3482_v37, %v4814_v59  ;;  %v914_v39 = vmax.f32 %v836_v36, 0.0 }
 0x173   : > { %v915_v40 = vmax.f32 %v839_v38, 0.0  ;;  %v3483_v41 = vpop.f32.mrb[36].mxu0 }
 0x174   : > { %v3484_v42 = vpop.f32.mrb[37].mxu0 }
 0x175   : > { %v3485_v43 = vadd.f32 %v3484_v42, %v3483_v41  ;;  %v3486_v44 = vpop.f32.mrb[38].mxu0  ;;  %v4880_v45 = vpack.c.bf16 %v915_v40, %v914_v39 }
 0x176   : > { %v3487_v47 = vpop.f32.mrb[39].mxu0 }
 0x177   : > { %v844_v48 = vadd.f32 %v3485_v43, %v4814_v59  ;;  %v3488_v49 = vadd.f32 %v3487_v47, %v3486_v44  ;;  %3710 = vmatprep.mubr.bf16.mxu1 %v4880_v45 }
 0x179   : > { %v847_v50 = vadd.f32 %v3488_v49, %v4814_v59  ;;  %v916_v51 = vmax.f32 %v844_v48, 0.0 }
 0x17b   : > { %v917_v52 = vmax.f32 %v847_v50, 0.0  ;;  %v3489_v53 = vpop.f32.mrb[40].mxu0 }
 0x17c   : > { %v3490_v54 = vpop.f32.mrb[41].mxu0 }
 0x17d   : > { %v3491_v55 = vadd.f32 %v3490_v54, %v3489_v53  ;;  %v3492_v56 = vpop.f32.mrb[42].mxu0  ;;  %v4885_v57 = vpack.c.bf16 %v917_v52, %v916_v51 }
 0x17e   : > { %v3493_v58 = vpop.f32.mrb[43].mxu0 }
 0x17f   : > { %v852_v61 = vadd.f32 %v3491_v55, %v4814_v59  ;;  %v3494_v62 = vadd.f32 %v3493_v58, %v3492_v56  ;;  %3711 = vmatmul.mubr.bf16.gmra.mrb[16].mxu1 %v4885_v57 }
 0x181   : > { %v855_v63 = vadd.f32 %v3494_v62, %v4814_v59  ;;  %v918_v0 = vmax.f32 %v852_v61, 0.0 }
 0x183   : > { %v919_v1 = vmax.f32 %v855_v63, 0.0  ;;  %v3495_v2 = vpop.f32.mrb[44].mxu0 }
 0x184   : > { %v3496_v3 = vpop.f32.mrb[45].mxu0 }
 0x185   : > { %v3497_v4 = vadd.f32 %v3496_v3, %v3495_v2  ;;  %v3498_v5 = vpop.f32.mrb[46].mxu0  ;;  %v4890_v6 = vpack.c.bf16 %v919_v1, %v918_v0  ;;  %v1666_v2 = vld [vmem:[%s5673_s7] sm:$0xff]  ;;  %v1667_v3 = vld [vmem:[%s5673_s7 + $0x8] sm:$0xff] }
 0x186   : > { %v3499_v7 = vpop.f32.mrb[47].mxu0 }
 0x187   : > { %v860_v11 = vadd.f32 %v3497_v4, %v4814_v59  ;;  %v3500_v12 = vadd.f32 %v3499_v7, %v3498_v5  ;;  %3714 = vmatprep.mubr.bf16.mxu1 %v4890_v6  ;;  %v3977_v5 = vpack.c.bf16 %v1667_v3, %v1666_v2 }
 0x189   : > { %v863_v13 = vadd.f32 %v3500_v12, %v4814_v59  ;;  %v920_v14 = vmax.f32 %v860_v11, 0.0  ;;  %3978 = vmatprep.subr.bf16.mxu0 %v3977_v5 }
 0x18a   : > { %3980 = vmatpush3.bf16.msra.mxu0 %v3977_v5 }
 0x18b   : > { %v921_v15 = vmax.f32 %v863_v13, 0.0  ;;  %v3501_v16 = vpop.f32.mrb[48].mxu0  ;;  %v1669_v13 = vld [vmem:[%s5673_s7 + $0x18] sm:$0xff] }
 0x18c   : > { %v3502_v17 = vpop.f32.mrb[49].mxu0 }
 0x18d   : > { %v3503_v18 = vadd.f32 %v3502_v17, %v3501_v16  ;;  %v3504_v19 = vpop.f32.mrb[50].mxu0  ;;  %v4895_v21 = vpack.c.bf16 %v921_v15, %v920_v14  ;;  %v1671_v15 = vld [vmem:[%s5673_s7 + $0x28] sm:$0xff]  ;;  %v1672_v16 = vld [vmem:[%s5673_s7 + $0x30] sm:$0xff]  ;;  %v1673_v17 = vld [vmem:[%s5673_s7 + $0x38] sm:$0xff] }
 0x18e   : > { %v3505_v23 = vpop.f32.mrb[51].mxu0 }
 0x18f   : > { %v868_v24 = vadd.f32 %v3503_v18, %v4814_v59  ;;  %v3506_v25 = vadd.f32 %v3505_v23, %v3504_v19  ;;  %3715 = vmatmul.mubr.bf16.gmra.mrb[20].mxu1 %v4895_v21  ;;  %v3989_v18 = vpack.c.bf16 %v1673_v17, %v1672_v16  ;;  %v1674_v19 = vld [vmem:[%s5673_s7 + $0x40] sm:$0xff]  ;;  %v1675_v23 = vld [vmem:[%s5673_s7 + $0x48] sm:$0xff] }
 0x191   : > { %v871_v26 = vadd.f32 %v3506_v25, %v4814_v59  ;;  %v922_v27 = vmax.f32 %v868_v24, 0.0  ;;  %v3993_v24 = vpack.c.bf16 %v1675_v23, %v1674_v19  ;;  %v1676_v25 = vld [vmem:[%s5673_s7 + $0x50] sm:$0xff] }
 0x193   : > { %v923_v28 = vmax.f32 %v871_v26, 0.0  ;;  %v3507_v29 = vpop.f32.mrb[52].mxu0  ;;  %v1677_v26 = vld [vmem:[%s5673_s7 + $0x58] sm:$0xff] }
 0x194   : > { %v3508_v30 = vpop.f32.mrb[53].mxu0 }
 0x195   : > { %v3509_v31 = vadd.f32 %v3508_v30, %v3507_v29  ;;  %v3510_v32 = vpop.f32.mrb[54].mxu0  ;;  %v4900_v35 = vpack.c.bf16 %v923_v28, %v922_v27  ;;  %v3997_v27 = vpack.c.bf16 %v1677_v26, %v1676_v25 }
 0x196   : > { %v3511_v36 = vpop.f32.mrb[55].mxu0 }
 0x197   : > { %v876_v37 = vadd.f32 %v3509_v31, %v4814_v59  ;;  %v3512_v38 = vadd.f32 %v3511_v36, %v3510_v32  ;;  %3718 = vmatprep.mubr.bf16.mxu1 %v4900_v35  ;;  %v1678_v32 = vld [vmem:[%s5673_s7 + $0x60] sm:$0xff]  ;;  %v1679_v36 = vld [vmem:[%s5673_s7 + $0x68] sm:$0xff] }
 0x199   : > { %v879_v39 = vadd.f32 %v3512_v38, %v4814_v59  ;;  %v924_v40 = vmax.f32 %v876_v37, 0.0  ;;  %v4001_v37 = vpack.c.bf16 %v1679_v36, %v1678_v32 }
 0x19b   : > { %v925_v41 = vmax.f32 %v879_v39, 0.0  ;;  %v3513_v42 = vpop.f32.mrb[56].mxu0 }
 0x19c   : > { %v3514_v43 = vpop.f32.mrb[57].mxu0 }
 0x19d   : > { %v3515_v44 = vadd.f32 %v3514_v43, %v3513_v42  ;;  %v3516_v47 = vpop.f32.mrb[58].mxu0  ;;  %v4905_v48 = vpack.c.bf16 %v925_v41, %v924_v40  ;;  %v1680_v42 = vld [vmem:[%s5673_s7 + $0x70] sm:$0xff]  ;;  %v1681_v43 = vld [vmem:[%s5673_s7 + $0x78] sm:$0xff] }
 0x19e   : > { %v3517_v49 = vpop.f32.mrb[59].mxu0 }
 0x19f   : > { %v884_v50 = vadd.f32 %v3515_v44, %v4814_v59  ;;  %v3518_v51 = vadd.f32 %v3517_v49, %v3516_v47  ;;  %3719 = vmatmul.mubr.bf16.gmra.mrb[24].mxu1 %v4905_v48  ;;  %v4005_v44 = vpack.c.bf16 %v1681_v43, %v1680_v42  ;;  %v5045_v43 = vld [vmem:[%s5672_s6] ss:$0 sm:$0xff] }
 0x1a1   : > { %v887_v52 = vadd.f32 %v3518_v51, %v4814_v59  ;;  %v926_v53 = vmax.f32 %v884_v50, 0.0 }
 0x1a3   : > { %v927_v54 = vmax.f32 %v887_v52, 0.0  ;;  %v3519_v55 = vpop.f32.mrb[60].mxu0 }
 0x1a4   : > { %v3520_v56 = vpop.f32.mrb[61].mxu0 }
 0x1a5   : > { %v3521_v58 = vadd.f32 %v3520_v56, %v3519_v55  ;;  %v3522_v61 = vpop.f32.mrb[62].mxu0  ;;  %v4910_v62 = vpack.c.bf16 %v927_v54, %v926_v53 }
 0x1a6   : > { %v3523_v63 = vpop.f32.mrb[63].mxu0 }
 0x1a7   : > { %5687 = vst [vmem:[#allocation6_spill] sm:$0xff] %v4910_v62  ;;  %v892_v0 = vadd.f32 %v3521_v58, %v4814_v59  ;;  %v3524_v1 = vadd.f32 %v3523_v63, %v3522_v61  ;;  %3722 = vmatprep.mubr.bf16.mxu1 %v4910_v62 }
 0x1a9   : > { %v895_v4 = vadd.f32 %v3524_v1, %v4814_v59  ;;  %v928_v7 = vmax.f32 %v892_v0, 0.0  ;;  %v1668_v59 = vld [vmem:[%s5673_s7 + $0x10] sm:$0xff] }
 0x1aa   : > { %v3981_v14 = vpack.c.bf16 %v1669_v13, %v1668_v59 }
 0x1ab   : > { %v929_v11 = vmax.f32 %v895_v4, 0.0 }
 0x1ac   : > { %3982 = vmatprep.subr.bf16.mxu0 %v3981_v14 }
 0x1ad   : > { %v4921_v12 = vpack.c.bf16 %v929_v11, %v928_v7  ;;  %3984 = vmatpush3.bf16.msra.mxu0 %v3981_v14  ;;  %v5002_v7 = vld [vmem:[%s5670_s4] ss:$0 sm:$0xff] }
 0x1af   : > { %5688 = vst [vmem:[#allocation7_spill] sm:$0xff] %v4921_v12  ;;  %3723 = vmatmul.mubr.bf16.gmra.mrb[28].mxu1 %v4921_v12 }
 0x1b0   : > { %3742 = vmatprep.mubr.bf16.mxu1 %v4818_v9 }
 0x1b7   : > { %3743 = vmatmul.mubr.bf16.vlgmr.msra.gmra.mrb[32].mxu1 %v4823_v20 }
 0x1b8   : > { %4011 = vmatpush3.bf16.msra.mxu1 %v4818_v9  ;;  %3746 = vmatprep.mubr.bf16.mxu1 %v4834_v33  ;;  %v1670_v9 = vld [vmem:[%s5673_s7 + $0x20] sm:$0xff] }
 0x1b9   : > { %4012 = vmatprep.subr.bf16.mxu1 %v5678_v10 }
 0x1bc   : > { %4014 = vmatpush3.bf16.msra.mxu1 %v4823_v20  ;;  %v3985_v20 = vpack.c.bf16 %v1671_v15, %v1670_v9 }
 0x1bd   : > { %4015 = vmatprep.subr.bf16.mxu1 %v5678_v10 }
 0x1be   : > { %3986 = vmatprep.subr.bf16.mxu0 %v3985_v20 }
 0x1bf   : > { %3747 = vmatmul.mubr.bf16.gmra.mrb[36].mxu1 %v4845_v46  ;;  %3988 = vmatpush3.bf16.msra.mxu0 %v3985_v20 }
 0x1c0   : > { %3750 = vmatprep.mubr.bf16.mxu1 %v4856_v60  ;;  %3990 = vmatprep.subr.bf16.mxu0 %v3989_v18 }
 0x1c3   : > { %3992 = vmatpush3.bf16.msra.mxu0 %v3989_v18 }
 0x1c4   : > { %3994 = vmatprep.subr.bf16.mxu0 %v3993_v24 }
 0x1c7   : > { %3751 = vmatmul.mubr.bf16.gmra.mrb[40].mxu1 %v4864_v8  ;;  %3996 = vmatpush3.bf16.msra.mxu0 %v3993_v24 }
 0x1c8   : > { %3754 = vmatprep.mubr.bf16.mxu1 %v4870_v22  ;;  %3998 = vmatprep.subr.bf16.mxu0 %v3997_v27 }
 0x1cb   : > { %4000 = vmatpush3.bf16.msra.mxu0 %v3997_v27 }
 0x1cc   : > { %4002 = vmatprep.subr.bf16.mxu0 %v4001_v37 }
 0x1cf   : > { %3755 = vmatmul.mubr.bf16.gmra.mrb[44].mxu1 %v4875_v34  ;;  %4004 = vmatpush3.bf16.msra.mxu0 %v4001_v37 }
 0x1d0   : > { %3758 = vmatprep.mubr.bf16.mxu1 %v4880_v45  ;;  %4006 = vmatprep.subr.bf16.mxu0 %v4005_v44 }
 0x1d3   : > { %4008 = vmatpush3.bf16.msra.mxu0 %v4005_v44 }
 0x1d4   : > { %4057 = vmatprep.subr.bf16.mxu0 %v5678_v10 }
 0x1d7   : > { %3759 = vmatmul.mubr.bf16.gmra.mrb[48].mxu1 %v4885_v57 }
 0x1d8   : > { %3762 = vmatprep.mubr.bf16.mxu1 %v4890_v6 }
 0x1df   : > { %3763 = vmatmul.mubr.bf16.gmra.mrb[52].mxu1 %v4895_v21 }
 0x1e0   : > { %3766 = vmatprep.mubr.bf16.mxu1 %v4900_v35 }
 0x1e7   : > { %3767 = vmatmul.mubr.bf16.gmra.mrb[56].mxu1 %v4905_v48 }
 0x1e8   : > { %3770 = vmatprep.mubr.bf16.mxu1 %v4910_v62 }
 0x1ef   : > { %3771 = vmatmul.mubr.bf16.gmra.mrb[60].mxu1 %v4921_v12 }
 0x212   : > { %v3696_v28 = vpop.f32.mrb[0].mxu1 }
 0x213   : > { %v1051_v29 = vpop.f32.mrb[1].mxu1  ;;  %v1060_v13 = vadd.f32 %v3696_v28, %v5002_v7 }
 0x214   : > { %v3697_v30 = vpop.f32.mrb[2].mxu1  ;;  %v1052_v14 = vadd.f32 %v5002_v7, %v1051_v29 }
 0x215   : > { %v1054_v31 = vpop.f32.mrb[3].mxu1  ;;  %v1063_v9 = vadd.f32 %v3697_v30, %v5002_v7  ;;  %4205 = vtanh.f32 %v1060_v13 }
 0x216   : > { %v1055_v15 = vadd.f32 %v5002_v7, %v1054_v31  ;;  %4207 = vtanh.f32 %v1052_v14 }
 0x217   : > { %4209 = vtanh.f32 %v1063_v9 }
 0x218   : > { %4211 = vtanh.f32 %v1055_v15 }
 0x21f   : > { %v5028_v31 = vpop.eup %4205 }
 0x220   : > { %v5033_v37 = vpop.eup %4207 }
 0x222   : > { %v3700_v38 = vpop.f32.mrb[4].mxu1 }
 0x223   : > { %v1067_v39 = vpop.f32.mrb[5].mxu1  ;;  %v1076_v20 = vadd.f32 %v3700_v38, %v5002_v7 }
 0x224   : > { %v3701_v40 = vpop.f32.mrb[6].mxu1  ;;  %v1068_v16 = vadd.f32 %v5002_v7, %v1067_v39  ;;  %v5036_v39 = vpop.eup %4209 }
 0x225   : > { %v1070_v41 = vpop.f32.mrb[7].mxu1  ;;  %v1079_v17 = vadd.f32 %v3701_v40, %v5002_v7  ;;  %4213 = vtanh.f32 %v1076_v20 }
 0x226   : > { %v1071_v18 = vadd.f32 %v5002_v7, %v1070_v41  ;;  %4215 = vtanh.f32 %v1068_v16  ;;  %v5039_v41 = vpop.eup %4211 }
 0x227   : > { %4217 = vtanh.f32 %v1079_v17 }
 0x228   : > { %4219 = vtanh.f32 %v1071_v18 }
 0x22f   : > { %v5047_v44 = vpop.eup %4213 }
 0x232   : > { %v3704_v47 = vpop.f32.mrb[8].mxu1 }
 0x233   : > { %v1083_v49 = vpop.f32.mrb[9].mxu1  ;;  %v1092_v19 = vadd.f32 %v3704_v47, %v5002_v7 }
 0x234   : > { %v3705_v50 = vpop.f32.mrb[10].mxu1  ;;  %v1084_v23 = vadd.f32 %v5002_v7, %v1083_v49  ;;  %v5050_v49 = vpop.eup %4215 }
 0x235   : > { %v1086_v51 = vpop.f32.mrb[11].mxu1  ;;  %v1095_v24 = vadd.f32 %v3705_v50, %v5002_v7  ;;  %4221 = vtanh.f32 %v1092_v19 }
 0x236   : > { %v1087_v25 = vadd.f32 %v5002_v7, %v1086_v51  ;;  %4223 = vtanh.f32 %v1084_v23 }
 0x237   : > { %4225 = vtanh.f32 %v1095_v24 }
 0x238   : > { %4227 = vtanh.f32 %v1087_v25 }
 0x242   : > { %v3708_v52 = vpop.f32.mrb[12].mxu1 }
 0x243   : > { %v1099_v53 = vpop.f32.mrb[13].mxu1  ;;  %v1108_v27 = vadd.f32 %v3708_v52, %v5002_v7  ;;  %v5053_v52 = vpop.eup %4217 }
 0x244   : > { %v3709_v54 = vpop.f32.mrb[14].mxu1  ;;  %v1100_v29 = vadd.f32 %v5002_v7, %v1099_v53 }
 0x245   : > { %v1102_v55 = vpop.f32.mrb[15].mxu1  ;;  %v1111_v32 = vadd.f32 %v3709_v54, %v5002_v7  ;;  %4229 = vtanh.f32 %v1108_v27 }
 0x246   : > { %v1103_v38 = vadd.f32 %v5002_v7, %v1102_v55  ;;  %4231 = vtanh.f32 %v1100_v29  ;;  %v5056_v55 = vpop.eup %4219 }
 0x247   : > { %4233 = vtanh.f32 %v1111_v32  ;;  %v5059_v13 = vpop.eup %4221 }
 0x248   : > { %4235 = vtanh.f32 %v1103_v38  ;;  %v5062_v9 = vpop.eup %4223 }
 0x249   : > { %v5065_v16 = vpop.eup %4225 }
 0x24a   : > { %v5069_v19 = vpop.eup %4227 }
 0x24f   : > { %v5073_v25 = vpop.eup %4229 }
 0x250   : > { %v5077_v29 = vpop.eup %4231 }
 0x251   : > { %v5081_v38 = vpop.eup %4233 }
 0x252   : > { %v3712_v56 = vpop.f32.mrb[16].mxu1 }
 0x253   : > { %v1115_v58 = vpop.f32.mrb[17].mxu1  ;;  %v1124_v40 = vadd.f32 %v3712_v56, %v5002_v7 }
 0x254   : > { %v3713_v61 = vpop.f32.mrb[18].mxu1  ;;  %v1116_v42 = vadd.f32 %v5002_v7, %v1115_v58 }
 0x255   : > { %v1118_v63 = vpop.f32.mrb[19].mxu1  ;;  %v1127_v47 = vadd.f32 %v3713_v61, %v5002_v7  ;;  %4237 = vtanh.f32 %v1124_v40 }
 0x256   : > { %v1119_v50 = vadd.f32 %v5002_v7, %v1118_v63  ;;  %4239 = vtanh.f32 %v1116_v42  ;;  %v5084_v42 = vpop.eup %4235 }
 0x257   : > { %4241 = vtanh.f32 %v1127_v47 }
 0x258   : > { %4243 = vtanh.f32 %v1119_v50 }
 0x25f   : > { %v5087_v50 = vpop.eup %4237 }
 0x262   : > { %v4987_v0 = vpop.f32.mrb[20].mxu1 }
 0x263   : > { %v4989_v1 = vpop.f32.mrb[21].mxu1  ;;  %v1140_v17 = vadd.f32 %v4987_v0, %v5002_v7 }
 0x264   : > { %v4991_v2 = vpop.f32.mrb[22].mxu1  ;;  %v1132_v23 = vadd.f32 %v5002_v7, %v4989_v1 }
 0x265   : > { %v4993_v3 = vpop.f32.mrb[23].mxu1  ;;  %v1143_v27 = vadd.f32 %v4991_v2, %v5002_v7 }
 0x266   : > { %v1135_v0 = vadd.f32 %v5002_v7, %v4993_v3 }
 0x272   : > { %v4995_v4 = vpop.f32.mrb[24].mxu1 }
 0x273   : > { %v4997_v5 = vpop.f32.mrb[25].mxu1 }
 0x274   : > { %v5004_v11 = vpop.f32.mrb[26].mxu1  ;;  %v1148_v62 = vadd.f32 %v5002_v7, %v4997_v5 }
 0x275   : > { %v5006_v59 = vpop.f32.mrb[27].mxu1 }
 0x282   : > { %v5020_v26 = vpop.f32.mrb[28].mxu1 }
 0x283   : > { %v5023_v28 = vpop.f32.mrb[29].mxu1 }
 0x284   : > { %v5026_v30 = vpop.f32.mrb[30].mxu1 }
 0x285   : > { %v5031_v36 = vpop.f32.mrb[31].mxu1 }
 0x28a   : > { %v3744_v51 = vpop.f32.mrb[32].mxu1 }
 0x28b   : > { %v1324_v53 = vadd.f32 %v3744_v51, %v5045_v43  ;;  %v1315_v54 = vpop.f32.mrb[33].mxu1 }
 0x28c   : > { %v1316_v56 = vadd.f32 %v5045_v43, %v1315_v54  ;;  %v3745_v58 = vpop.f32.mrb[34].mxu1  ;;  %v5090_v54 = vpop.eup %4239 }
 0x28d   : > { %v3369_v61 = vmul.f32 -1.442695, %v1324_v53  ;;  %v1327_v14 = vadd.f32 %v3745_v58, %v5045_v43  ;;  %v1318_v63 = vpop.f32.mrb[35].mxu1 }
 0x28e   : > { %v3367_v15 = vmul.f32 -1.442695, %v1316_v56  ;;  %v1319_v20 = vadd.f32 %v5045_v43, %v1318_v63 }
 0x28f   : > { %4245 = vpow2.f32 %v3369_v61  ;;  %v3370_v18 = vmul.f32 -1.442695, %v1327_v14  ;;  %v5093_v61 = vpop.eup %4241  ;;  %v1156_v14 = vadd.f32 %v4995_v4, %v5002_v7 }
 0x290   : > { %4247 = vpow2.f32 %v3367_v15  ;;  %v3368_v24 = vmul.f32 -1.442695, %v1319_v20  ;;  %v5097_v15 = vpop.eup %4243 }
 0x291   : > { %4249 = vpow2.f32 %v3370_v18 }
 0x292   : > { %4251 = vpow2.f32 %v3368_v24  ;;  %v3748_v32 = vpop.f32.mrb[36].mxu1 }
 0x293   : > { %4253 = vtanh.f32 %v1140_v17  ;;  %v1340_v1 = vadd.f32 %v3748_v32, %v5045_v43  ;;  %v1331_v40 = vpop.f32.mrb[37].mxu1 }
 0x294   : > { %4255 = vtanh.f32 %v1132_v23  ;;  %v1332_v47 = vadd.f32 %v5045_v43, %v1331_v40  ;;  %v3749_v2 = vpop.f32.mrb[38].mxu1 }
 0x295   : > { %4257 = vtanh.f32 %v1143_v27  ;;  %v3373_v51 = vmul.f32 -1.442695, %v1340_v1  ;;  %v1343_v3 = vadd.f32 %v3749_v2, %v5045_v43  ;;  %v1334_v53 = vpop.f32.mrb[39].mxu1 }
 0x296   : > { %4259 = vtanh.f32 %v1135_v0  ;;  %v3371_v56 = vmul.f32 -1.442695, %v1332_v47  ;;  %v1335_v58 = vadd.f32 %v5045_v43, %v1334_v53 }
 0x297   : > { %4261 = vpow2.f32 %v3373_v51  ;;  %v3374_v63 = vmul.f32 -1.442695, %v1343_v3 }
 0x298   : > { %4263 = vpow2.f32 %v3371_v56  ;;  %v3372_v20 = vmul.f32 -1.442695, %v1335_v58 }
 0x299   : > { %v4246_v17 = vpop.eup %4245  ;;  %4265 = vpow2.f32 %v3374_v63 }
 0x29a   : > { %v4248_v18 = vpop.eup %4247  ;;  %v1540_v23 = vadd.f32 1.0, %v4246_v17  ;;  %4267 = vpow2.f32 %v3372_v20  ;;  %v3752_v24 = vpop.f32.mrb[40].mxu1 }
 0x29b   : > { %v4250_v27 = vpop.eup %4249  ;;  %4269 = vtanh.f32 %v1156_v14  ;;  %v1538_v0 = vadd.f32 1.0, %v4248_v18  ;;  %v1356_v32 = vadd.f32 %v3752_v24, %v5045_v43  ;;  %v1347_v1 = vpop.f32.mrb[41].mxu1 }
 0x29c   : > { %v4252_v40 = vpop.eup %4251  ;;  %4271 = vrcp.f32 %v1540_v23  ;;  %v1541_v4 = vadd.f32 1.0, %v4250_v27  ;;  %v1348_v47 = vadd.f32 %v5045_v43, %v1347_v1  ;;  %v3753_v2 = vpop.f32.mrb[42].mxu1 }
 0x29d   : > { %v5101_v51 = vpop.eup %4253  ;;  %4273 = vrcp.f32 %v1538_v0  ;;  %v1539_v3 = vadd.f32 1.0, %v4252_v40  ;;  %v3377_v53 = vmul.f32 -1.442695, %v1356_v32  ;;  %v1359_v56 = vadd.f32 %v3753_v2, %v5045_v43  ;;  %v1350_v58 = vpop.f32.mrb[43].mxu1 }
 0x29e   : > { %v5104_v63 = vpop.eup %4255  ;;  %4275 = vrcp.f32 %v1541_v4  ;;  %v3375_v14 = vmul.f32 -1.442695, %v1348_v47  ;;  %v1351_v20 = vadd.f32 %v5045_v43, %v1350_v58 }
 0x29f   : > { %v5107_v17 = vpop.eup %4257  ;;  %4277 = vrcp.f32 %v1539_v3  ;;  %v3378_v18 = vmul.f32 -1.442695, %v1359_v56 }
 0x2a0   : > { %v5109_v23 = vpop.eup %4259  ;;  %4279 = vpow2.f32 %v3377_v53  ;;  %v3376_v24 = vmul.f32 -1.442695, %v1351_v20 }
 0x2a1   : > { %v4262_v27 = vpop.eup %4261  ;;  %4281 = vpow2.f32 %v3375_v14 }
 0x2a2   : > { %v4264_v0 = vpop.eup %4263  ;;  %v1544_v32 = vadd.f32 1.0, %v4262_v27  ;;  %4283 = vpow2.f32 %v3378_v18  ;;  %v3756_v1 = vpop.f32.mrb[44].mxu1 }
 0x2a3   : > { %v4266_v40 = vpop.eup %4265  ;;  %v1542_v2 = vadd.f32 1.0, %v4264_v0  ;;  %4285 = vpow2.f32 %v3376_v24  ;;  %v1372_v4 = vadd.f32 %v3756_v1, %v5045_v43  ;;  %v1363_v47 = vpop.f32.mrb[45].mxu1 }
 0x2a4   : > { %v4268_v58 = vpop.eup %4267  ;;  %4287 = vrcp.f32 %v1544_v32  ;;  %v1545_v3 = vadd.f32 1.0, %v4266_v40  ;;  %v1364_v56 = vadd.f32 %v5045_v43, %v1363_v47  ;;  %v3757_v10 = vpop.f32.mrb[46].mxu1 }
 0x2a5   : > { %v5113_v53 = vpop.eup %4269  ;;  %4289 = vrcp.f32 %v1542_v2  ;;  %v1543_v14 = vadd.f32 1.0, %v4268_v58  ;;  %v3381_v20 = vmul.f32 -1.442695, %v1372_v4  ;;  %v1375_v18 = vadd.f32 %v3757_v10, %v5045_v43  ;;  %v1366_v27 = vpop.f32.mrb[47].mxu1 }
 0x2a6   : > { %v4272_v12 = vpop.eup %4271  ;;  %4291 = vrcp.f32 %v1545_v3  ;;  %v3379_v24 = vmul.f32 -1.442695, %v1364_v56  ;;  %v1367_v0 = vadd.f32 %v5045_v43, %v1366_v27 }
 0x2a7   : > { %v4274_v1 = vpop.eup %4273  ;;  %4293 = vrcp.f32 %v1543_v14  ;;  %v3382_v32 = vmul.f32 -1.442695, %v1375_v18  ;;  %v1636_v40 = vmul.f32 %v4272_v12, %v5028_v31 }
 0x2a8   : > { %v4276_v47 = vpop.eup %4275  ;;  %4295 = vpow2.f32 %v3381_v20  ;;  %v3380_v2 = vmul.f32 -1.442695, %v1367_v0  ;;  %v1634_v4 = vmul.f32 %v4274_v1, %v5033_v37 }
 0x2a9   : > { %v4278_v10 = vpop.eup %4277  ;;  %4297 = vpow2.f32 %v3379_v24  ;;  %v1637_v58 = vmul.f32 %v4276_v47, %v5036_v39 }
 0x2aa   : > { %v4280_v3 = vpop.eup %4279  ;;  %4299 = vpow2.f32 %v3382_v32  ;;  %v3760_v56 = vpop.f32.mrb[48].mxu1  ;;  %3806 = vmatprep.mubr.f32.mxu0 %v1634_v4  ;;  %v1635_v14 = vmul.f32 %v4278_v10, %v5039_v41 }
 0x2ab   : > { %v4282_v18 = vpop.eup %4281  ;;  %v1548_v12 = vadd.f32 1.0, %v4280_v3  ;;  %4301 = vpow2.f32 %v3380_v2  ;;  %v1388_v31 = vadd.f32 %v3760_v56, %v5045_v43  ;;  %v1379_v5 = vpop.f32.mrb[49].mxu1 }
 0x2ac   : > { %v4284_v20 = vpop.eup %4283  ;;  %4303 = vtanh.f32 %v1148_v62  ;;  %v1546_v27 = vadd.f32 1.0, %v4282_v18  ;;  %v1380_v37 = vadd.f32 %v5045_v43, %v1379_v5  ;;  %v3761_v24 = vpop.f32.mrb[50].mxu1  ;;  %3807 = vmatmul.mubr.f32.vlgmr.msra.gmra.mrb[64].mxu0 %v1635_v14 }
 0x2ad   : > { %v4286_v39 = vpop.eup %4285  ;;  %4305 = vrcp.f32 %v1548_v12  ;;  %v1549_v0 = vadd.f32 1.0, %v4284_v20  ;;  %v3385_v1 = vmul.f32 -1.442695, %v1388_v31  ;;  %v1391_v32 = vadd.f32 %v3761_v24, %v5045_v43  ;;  %v1382_v41 = vpop.f32.mrb[51].mxu1  ;;  %3809 = vmatprep.mubr.f32.mxu0 %v1636_v40 }
 0x2ae   : > { %v4288_v47 = vpop.eup %4287  ;;  %4307 = vrcp.f32 %v1546_v27  ;;  %v1547_v2 = vadd.f32 1.0, %v4286_v39  ;;  %v3383_v4 = vmul.f32 -1.442695, %v1380_v37  ;;  %v1383_v10 = vadd.f32 %v5045_v43, %v1382_v41 }
 0x2af   : > { %v4290_v62 = vpop.eup %4289  ;;  %4309 = vrcp.f32 %v1549_v0  ;;  %v3386_v3 = vmul.f32 -1.442695, %v1391_v32  ;;  %v1640_v56 = vmul.f32 %v4288_v47, %v5047_v44 }
 0x2b0   : > { %v4292_v14 = vpop.eup %4291  ;;  %4311 = vrcp.f32 %v1547_v2  ;;  %v3384_v18 = vmul.f32 -1.442695, %v1383_v10  ;;  %3810 = vmatmul.mubr.f32.gmra.mrb[66].mxu0 %v1637_v58  ;;  %v1638_v12 = vmul.f32 %v4290_v62, %v5050_v49 }
 0x2b1   : > { %v4294_v31 = vpop.eup %4293  ;;  %4313 = vpow2.f32 %v3385_v1  ;;  %v1641_v40 = vmul.f32 %v4292_v14, %v5053_v52 }
 0x2b2   : > { %v4296_v5 = vpop.eup %4295  ;;  %4315 = vpow2.f32 %v3383_v4  ;;  %v3764_v20 = vpop.f32.mrb[52].mxu1  ;;  %3812 = vmatprep.mubr.f32.mxu0 %v1638_v12  ;;  %v1639_v27 = vmul.f32 %v4294_v31, %v5056_v55 }
 0x2b3   : > { %v4298_v37 = vpop.eup %4297  ;;  %v1552_v24 = vadd.f32 1.0, %v4296_v5  ;;  %4317 = vpow2.f32 %v3386_v3  ;;  %v1404_v44 = vadd.f32 %v3764_v20, %v5045_v43  ;;  %v1395_v39 = vpop.f32.mrb[53].mxu1 }
 0x2b4   : > { %v4300_v0 = vpop.eup %4299  ;;  %v1550_v58 = vadd.f32 1.0, %v4298_v37  ;;  %4319 = vpow2.f32 %v3384_v18  ;;  %v1396_v49 = vadd.f32 %v5045_v43, %v1395_v39  ;;  %v3765_v1 = vpop.f32.mrb[54].mxu1  ;;  %3813 = vmatmul.mubr.f32.gmra.mrb[68].mxu0 %v1639_v27 }
 0x2b5   : > { %v4302_v52 = vpop.eup %4301  ;;  %4321 = vrcp.f32 %v1552_v24  ;;  %v1553_v32 = vadd.f32 1.0, %v4300_v0  ;;  %v3389_v41 = vmul.f32 -1.442695, %v1404_v44  ;;  %v1407_v47 = vadd.f32 %v3765_v1, %v5045_v43  ;;  %v1398_v55 = vpop.f32.mrb[55].mxu1  ;;  %3815 = vmatprep.mubr.f32.mxu0 %v1640_v56 }
 0x2b6   : > { %v5134_v2 = vpop.eup %4303  ;;  %4323 = vrcp.f32 %v1550_v58  ;;  %v1551_v4 = vadd.f32 1.0, %v4302_v52  ;;  %v3387_v10 = vmul.f32 -1.442695, %v1396_v49  ;;  %v1399_v62 = vadd.f32 %v5045_v43, %v1398_v55 }
 0x2b7   : > { %v4306_v3 = vpop.eup %4305  ;;  %4325 = vrcp.f32 %v1553_v32  ;;  %v3390_v14 = vmul.f32 -1.442695, %v1407_v47  ;;  %v1159_v56 = vadd.f32 %v5004_v11, %v5002_v7 }
 0x2b8   : > { %v4308_v18 = vpop.eup %4307  ;;  %4327 = vrcp.f32 %v1551_v4  ;;  %v3388_v12 = vmul.f32 -1.442695, %v1399_v62  ;;  %3816 = vmatmul.mubr.f32.gmra.mrb[70].mxu0 %v1641_v40  ;;  %v1644_v31 = vmul.f32 %v4306_v3, %v5059_v13 }
 0x2b9   : > { %v4310_v5 = vpop.eup %4309  ;;  %4329 = vpow2.f32 %v3389_v41  ;;  %v1642_v20 = vmul.f32 %v4308_v18, %v5062_v9 }
 0x2ba   : > { %v4312_v27 = vpop.eup %4311  ;;  %4331 = vpow2.f32 %v3387_v10  ;;  %v3768_v37 = vpop.f32.mrb[56].mxu1  ;;  %v1645_v24 = vmul.f32 %v4310_v5, %v5065_v16 }
 0x2bb   : > { %v4314_v44 = vpop.eup %4313  ;;  %4333 = vpow2.f32 %v3390_v14  ;;  %v1420_v39 = vadd.f32 %v3768_v37, %v5045_v43  ;;  %3818 = vmatprep.mubr.f32.mxu0 %v1642_v20  ;;  %v1411_v40 = vpop.f32.mrb[57].mxu1  ;;  %v1643_v13 = vmul.f32 %v4312_v27, %v5069_v19 }
 0x2bc   : > { %v4316_v0 = vpop.eup %4315  ;;  %v1556_v58 = vadd.f32 1.0, %v4314_v44  ;;  %4335 = vpow2.f32 %v3388_v12  ;;  %v1412_v11 = vadd.f32 %v5045_v43, %v1411_v40  ;;  %v3769_v49 = vpop.f32.mrb[58].mxu1 }
 0x2bd   : > { %v4318_v9 = vpop.eup %4317  ;;  %4337 = vtanh.f32 %v1159_v56  ;;  %v1554_v1 = vadd.f32 1.0, %v4316_v0  ;;  %v1423_v52 = vadd.f32 %v3769_v49, %v5045_v43  ;;  %3819 = vmatmul.mubr.f32.gmra.mrb[72].mxu0 %v1643_v13  ;;  %v1414_v16 = vpop.f32.mrb[59].mxu1  ;;  %v3393_v47 = vmul.f32 -1.442695, %v1420_v39 }
 0x2be   : > { %v4320_v32 = vpop.eup %4319  ;;  %4339 = vrcp.f32 %v1556_v58  ;;  %v1557_v41 = vadd.f32 1.0, %v4318_v9  ;;  %v1415_v55 = vadd.f32 %v5045_v43, %v1414_v16  ;;  %3821 = vmatprep.mubr.f32.mxu0 %v1644_v31  ;;  %v3391_v10 = vmul.f32 -1.442695, %v1412_v11 }
 0x2bf   : > { %v4322_v19 = vpop.eup %4321  ;;  %4341 = vrcp.f32 %v1554_v1  ;;  %v1555_v4 = vadd.f32 1.0, %v4320_v32  ;;  %v3394_v3 = vmul.f32 -1.442695, %v1423_v52 }
 0x2c0   : > { %v4324_v62 = vpop.eup %4323  ;;  %4343 = vrcp.f32 %v1557_v41  ;;  %v1648_v14 = vmul.f32 %v4322_v19, %v5073_v25  ;;  %v3392_v12 = vmul.f32 -1.442695, %v1415_v55 }
 0x2c1   : > { %v4326_v18 = vpop.eup %4325  ;;  %4345 = vrcp.f32 %v1555_v4  ;;  %3822 = vmatmul.mubr.f32.gmra.mrb[74].mxu0 %v1645_v24  ;;  %v1646_v5 = vmul.f32 %v4324_v62, %v5077_v29 }
 0x2c2   : > { %v4328_v56 = vpop.eup %4327  ;;  %4347 = vpow2.f32 %v3393_v47  ;;  %v3772_v20 = vpop.f32.mrb[60].mxu1  ;;  %v1649_v31 = vmul.f32 %v4326_v18, %v5081_v38 }
 0x2c3   : > { %v4330_v27 = vpop.eup %4329  ;;  %4349 = vpow2.f32 %v3391_v10  ;;  %v1436_v37 = vadd.f32 %v3772_v20, %v5045_v43  ;;  %3824 = vmatprep.mubr.f32.mxu0 %v1646_v5  ;;  %v1427_v44 = vpop.f32.mrb[61].mxu1  ;;  %v1647_v39 = vmul.f32 %v4328_v56, %v5084_v42  ;;  %v1151_v10 = vadd.f32 %v5002_v7, %v5006_v59 }
 0x2c4   : > { %v4332_v25 = vpop.eup %4331  ;;  %v1560_v40 = vadd.f32 1.0, %v4330_v27  ;;  %4351 = vpow2.f32 %v3394_v3  ;;  %v1428_v24 = vadd.f32 %v5045_v43, %v1427_v44  ;;  %v3773_v13 = vpop.f32.mrb[62].mxu1 }
 0x2c5   : > { %v4334_v29 = vpop.eup %4333  ;;  %v1558_v0 = vadd.f32 1.0, %v4332_v25  ;;  %4353 = vpow2.f32 %v3392_v12  ;;  %v1439_v58 = vadd.f32 %v3773_v13, %v5045_v43  ;;  %3825 = vmatmul.mubr.f32.gmra.mrb[76].mxu0 %v1647_v39  ;;  %v1430_v38 = vpop.f32.mrb[63].mxu1  ;;  %v3397_v9 = vmul.f32 -1.442695, %v1436_v37 }
 0x2c6   : > { %v4336_v11 = vpop.eup %4335  ;;  %4355 = vrcp.f32 %v1560_v40  ;;  %v1561_v49 = vadd.f32 1.0, %v4334_v29  ;;  %v1431_v1 = vadd.f32 %v5045_v43, %v1430_v38  ;;  %3827 = vmatprep.mubr.f32.mxu0 %v1648_v14  ;;  %v3395_v16 = vmul.f32 -1.442695, %v1428_v24 }
 0x2c7   : > { %v5155_v42 = vpop.eup %4337  ;;  %4357 = vrcp.f32 %v1558_v0  ;;  %v1559_v52 = vadd.f32 1.0, %v4336_v11  ;;  %v3398_v41 = vmul.f32 -1.442695, %v1439_v58  ;;  %v1175_v37 = vadd.f32 %v5026_v30, %v5002_v7 }
 0x2c8   : > { %v4340_v32 = vpop.eup %4339  ;;  %4359 = vrcp.f32 %v1561_v49  ;;  %v3396_v55 = vmul.f32 -1.442695, %v1431_v1 }
 0x2c9   : > { %v4342_v47 = vpop.eup %4341  ;;  %4361 = vrcp.f32 %v1559_v52  ;;  %3828 = vmatmul.mubr.f32.gmra.mrb[78].mxu0 %v1649_v31  ;;  %v1652_v19 = vmul.f32 %v4340_v32, %v5087_v50  ;;  %v1164_v31 = vadd.f32 %v5002_v7, %v5023_v28 }
 0x2ca   : > { %v4344_v4 = vpop.eup %4343  ;;  %4363 = vpow2.f32 %v3397_v9  ;;  %v1650_v43 = vmul.f32 %v4342_v47, %v5090_v54  ;;  %v1172_v54 = vadd.f32 %v5020_v26, %v5002_v7  ;;  %v1167_v26 = vadd.f32 %v5002_v7, %v5031_v36 }
 0x2cb   : > { %v4346_v62 = vpop.eup %4345  ;;  %4365 = vpow2.f32 %v3395_v16  ;;  %v1653_v3 = vmul.f32 %v4344_v4, %v5093_v61 }
 0x2cc   : > { %v4348_v14 = vpop.eup %4347  ;;  %4367 = vpow2.f32 %v3398_v41  ;;  %3830 = vmatprep.mubr.f32.mxu0 %v1650_v43  ;;  %v1651_v18 = vmul.f32 %v4346_v62, %v5097_v15 }
 0x2cd   : > { %v4350_v12 = vpop.eup %4349  ;;  %v1564_v5 = vadd.f32 1.0, %v4348_v14  ;;  %4369 = vpow2.f32 %v3396_v55 }
 0x2ce   : > { %v4352_v50 = vpop.eup %4351  ;;  %4371 = vtanh.f32 %v1151_v10  ;;  %v1562_v56 = vadd.f32 1.0, %v4350_v12  ;;  %3831 = vmatmul.mubr.f32.gmra.mrb[80].mxu0 %v1651_v18 }
 0x2cf   : > { %v4354_v59 = vpop.eup %4353  ;;  %4373 = vrcp.f32 %v1564_v5  ;;  %v1565_v20 = vadd.f32 1.0, %v4352_v50  ;;  %3833 = vmatprep.mubr.f32.mxu0 %v1652_v19 }
 0x2d0   : > { %v4356_v61 = vpop.eup %4355  ;;  %4375 = vrcp.f32 %v1562_v56  ;;  %v1563_v15 = vadd.f32 1.0, %v4354_v59 }
 0x2d1   : > { %v4358_v27 = vpop.eup %4357  ;;  %4377 = vrcp.f32 %v1565_v20  ;;  %v1656_v44 = vmul.f32 %v4356_v61, %v5101_v51 }
 0x2d2   : > { %v4360_v39 = vpop.eup %4359  ;;  %4379 = vrcp.f32 %v1563_v15  ;;  %3834 = vmatmul.mubr.f32.gmra.mrb[82].mxu0 %v1653_v3  ;;  %v1654_v25 = vmul.f32 %v4358_v27, %v5104_v63 }
 0x2d3   : > { %v4362_v40 = vpop.eup %4361  ;;  %4381 = vtanh.f32 %v1172_v54  ;;  %v1657_v28 = vmul.f32 %v4360_v39, %v5107_v17 }
 0x2d4   : > { %v4364_v24 = vpop.eup %4363  ;;  %4383 = vtanh.f32 %v1164_v31  ;;  %3836 = vmatprep.mubr.f32.mxu0 %v1654_v25  ;;  %v1655_v30 = vmul.f32 %v4362_v40, %v5109_v23 }
 0x2d5   : > { %v4366_v13 = vpop.eup %4365  ;;  %4385 = vtanh.f32 %v1175_v37  ;;  %v1568_v51 = vadd.f32 1.0, %v4364_v24 }
 0x2d6   : > { %v4368_v29 = vpop.eup %4367  ;;  %4387 = vtanh.f32 %v1167_v26  ;;  %v1566_v0 = vadd.f32 1.0, %v4366_v13  ;;  %3837 = vmatmul.mubr.f32.gmra.mrb[84].mxu0 %v1655_v30 }
 0x2d7   : > { %v4370_v7 = vpop.eup %4369  ;;  %4389 = vrcp.f32 %v1568_v51  ;;  %v1569_v36 = vadd.f32 1.0, %v4368_v29  ;;  %3839 = vmatprep.mubr.f32.mxu0 %v1656_v44 }
 0x2d8   : > { %v4372_v63 = vpop.eup %4371  ;;  %4391 = vrcp.f32 %v1566_v0  ;;  %v1567_v58 = vadd.f32 1.0, %v4370_v7 }
 0x2d9   : > { %v4374_v17 = vpop.eup %4373  ;;  %4393 = vrcp.f32 %v1569_v36 }
 0x2da   : > { %v4376_v38 = vpop.eup %4375  ;;  %4395 = vrcp.f32 %v1567_v58  ;;  %3840 = vmatmul.mubr.f32.gmra.mrb[86].mxu0 %v1657_v28  ;;  %v1660_v23 = vmul.f32 %v4374_v17, %v5113_v53 }
 0x2db   : > { %v4378_v11 = vpop.eup %4377  ;;  %v1658_v49 = vmul.f32 %v4376_v38, %v5134_v2 }
 0x2dc   : > { %v4380_v9 = vpop.eup %4379  ;;  %v1661_v1 = vmul.f32 %v4378_v11, %v5155_v42  ;;  %v5178_v42 = vld [vmem:[#allocation2] ss:$0 sm:$0xff] }
 0x2dd   : > { %v4382_v52 = vpop.eup %4381  ;;  %3842 = vmatprep.mubr.f32.mxu0 %v1658_v49  ;;  %v1659_v16 = vmul.f32 %v4380_v9, %v4372_v63 }
 0x2de   : > { %v4384_v32 = vpop.eup %4383 }
 0x2df   : > { %v4386_v41 = vpop.eup %4385  ;;  %3843 = vmatmul.mubr.f32.gmra.mrb[88].mxu0 %v1659_v16 }
 0x2e0   : > { %v4388_v47 = vpop.eup %4387  ;;  %3845 = vmatprep.mubr.f32.mxu0 %v1660_v23 }
 0x2e1   : > { %v4390_v55 = vpop.eup %4389 }
 0x2e2   : > { %v4392_v19 = vpop.eup %4391  ;;  %v1664_v4 = vmul.f32 %v4390_v55, %v4382_v52 }
 0x2e3   : > { %v4394_v10 = vpop.eup %4393  ;;  %3846 = vmatmul.mubr.f32.gmra.mrb[90].mxu0 %v1661_v1  ;;  %v1662_v53 = vmul.f32 %v4392_v19, %v4384_v32 }
 0x2e4   : > { %v4396_v43 = vpop.eup %4395  ;;  %v1665_v62 = vmul.f32 %v4394_v10, %v4386_v41 }
 0x2e5   : > { %3848 = vmatprep.mubr.f32.mxu0 %v1662_v53  ;;  %v1663_v2 = vmul.f32 %v4396_v43, %v4388_v47 }
 0x2e7   : > { %3849 = vmatmul.mubr.f32.gmra.mrb[92].mxu0 %v1663_v2 }
 0x2e8   : > { %3851 = vmatprep.mubr.f32.mxu0 %v1664_v4 }
 0x2eb   : > { %3852 = vmatmul.mubr.f32.gmra.mrb[94].mxu0 %v1665_v62 }
 0x37f   : > { %v3808_v3 = vpop.f32.mrb[64].mxu0 }
 0x380   : > { %v1761_v14 = vadd.f32 %v3808_v3, %v5178_v42  ;;  %v1755_v18 = vpop.f32.mrb[65].mxu0 }
 0x381   : > { %v1756_v12 = vadd.f32 %v5178_v42, %v1755_v18 }
 0x382   : > { %v1916_v5 = vsel %vm1914_vm0, %v1761_v14, -inf }
 0x383   : > { %v1915_v50 = vsel %vm1914_vm0, %v1756_v12, -inf  ;;  %v3811_v56 = vpop.f32.mrb[66].mxu0 }
 0x384   : > { %v1917_v59 = vmax.f32 %v1915_v50, %v1916_v5  ;;  %v1765_v54 = vpop.f32.mrb[67].mxu0  ;;  %v1771_v20 = vadd.f32 %v3811_v56, %v5178_v42 }
 0x385   : > { %v1766_v61 = vadd.f32 %v5178_v42, %v1765_v54 }
 0x386   : > { %v1920_v39 = vsel %vm1914_vm0, %v1771_v20, -inf }
 0x387   : > { %v1918_v31 = vsel %vm1914_vm0, %v1766_v61, -inf  ;;  %v3814_v15 = vpop.f32.mrb[68].mxu0 }
 0x388   : > { %v1919_v27 = vmax.f32 %v1917_v59, %v1918_v31  ;;  %v5188_v37 = vadd.f32 %v3814_v15, %v5178_v42  ;;  %v1775_v44 = vpop.f32.mrb[69].mxu0 }
 0x389   : > { %v5192_v26 = vadd.f32 %v5178_v42, %v1775_v44 }
 0x38a   : > { %v1921_v25 = vmax.f32 %v1919_v27, %v1920_v39  ;;  %v1929_v40 = vsel %vm1914_vm0, %v5188_v37, -inf }
 0x38b   : > { %v1928_v28 = vsel %vm1914_vm0, %v5192_v26, -inf  ;;  %v3817_v24 = vpop.f32.mrb[70].mxu0 }
 0x38c   : > { %v1922_v30 = vrot.slane %v1921_v25, 4  ;;  %v1930_v13 = vmax.f32 %v1928_v28, %v1929_v40  ;;  %v1785_v51 = vpop.f32.mrb[71].mxu0  ;;  %v5199_v29 = vadd.f32 %v3817_v24, %v5178_v42 }
 0x38d   : > { %v5202_v0 = vadd.f32 %v5178_v42, %v1785_v51 }
 0x38e   : > { %v1923_v7 = vmax.f32 %v1921_v25, %v1922_v30  ;;  %v1933_v38 = vsel %vm1914_vm0, %v5199_v29, -inf }
 0x38f   : > { %v1931_v36 = vsel %vm1914_vm0, %v5202_v0, -inf }
 0x390   : > { %v1924_v63 = vrot.slane %v1923_v7, 2  ;;  %v1932_v58 = vmax.f32 %v1930_v13, %v1931_v36  ;;  %v3820_v17 = vpop.f32.mrb[72].mxu0 }
 0x391   : > { %v5209_v23 = vadd.f32 %v3820_v17, %v5178_v42  ;;  %v1795_v11 = vpop.f32.mrb[73].mxu0 }
 0x392   : > { %v1925_v49 = vmax.f32 %v1923_v7, %v1924_v63  ;;  %v1934_v9 = vmax.f32 %v1932_v58, %v1933_v38  ;;  %v5212_v1 = vadd.f32 %v5178_v42, %v1795_v11 }
 0x393   : > { %v1942_v52 = vsel %vm1914_vm0, %v5209_v23, -inf }
 0x394   : > { %v1926_v16 = vrot.slane %v1925_v49, 1  ;;  %v1935_v32 = vrot.slane %v1934_v9, 4  ;;  %v1941_v41 = vsel %vm1914_vm0, %v5212_v1, -inf  ;;  %v3823_v47 = vpop.f32.mrb[74].mxu0 }
 0x395   : > { %v1943_v55 = vmax.f32 %v1941_v41, %v1942_v52  ;;  %v1805_v19 = vpop.f32.mrb[75].mxu0  ;;  %v5222_v43 = vadd.f32 %v3823_v47, %v5178_v42 }
 0x396   : > { %v1927_v4 = vmax.f32 %v1925_v49, %v1926_v16  ;;  %v1936_v10 = vmax.f32 %v1934_v9, %v1935_v32  ;;  %v5219_v53 = vadd.f32 %v5178_v42, %v1805_v19 }
 0x397   : > { %v1946_v40 = vsel %vm1914_vm0, %v5222_v43, -inf }
 0x398   : > { %v2020_v62 = vsub.f32 %v1761_v14, %v1927_v4  ;;  %v2021_v2 = vsub.f32 %v1766_v61, %v1927_v4  ;;  %v2022_v3 = vsub.f32 %v1771_v20, %v1927_v4  ;;  %v1937_v18 = vrot.slane %v1936_v10, 2  ;;  %v3826_v5 = vpop.f32.mrb[76].mxu0 }
 0x399   : > { %v1944_v50 = vsel %vm1914_vm0, %v5219_v53, -inf  ;;  %v5227_v56 = vadd.f32 %v3826_v5, %v5178_v42  ;;  %v1815_v59 = vpop.f32.mrb[77].mxu0  ;;  %v2019_v54 = vsub.f32 %v1756_v12, %v1927_v4 }
 0x39a   : > { %v2053_v31 = vmul.f32 1.442695, %v2020_v62  ;;  %v2055_v15 = vmul.f32 1.442695, %v2021_v2  ;;  %v2057_v27 = vmul.f32 1.442695, %v2022_v3  ;;  %v1938_v44 = vmax.f32 %v1936_v10, %v1937_v18 }
 0x39b   : > { %v1945_v39 = vmax.f32 %v1943_v55, %v1944_v50  ;;  %v1955_v14 = vsel %vm1914_vm0, %v5227_v56, -inf  ;;  %v5232_v20 = vadd.f32 %v5178_v42, %v1815_v59  ;;  %v2051_v61 = vmul.f32 1.442695, %v2019_v54 }
 0x39c   : > { %4397 = vpow2.f32 %v2053_v31  ;;  %v1939_v25 = vrot.slane %v1938_v44, 1  ;;  %v3829_v28 = vpop.f32.mrb[78].mxu0 }
 0x39d   : > { %4399 = vpow2.f32 %v2055_v15  ;;  %v1947_v12 = vmax.f32 %v1945_v39, %v1946_v40  ;;  %v1954_v24 = vsel %vm1914_vm0, %v5232_v20, -inf  ;;  %v5239_v30 = vadd.f32 %v3829_v28, %v5178_v42  ;;  %v1825_v13 = vpop.f32.mrb[79].mxu0 }
 0x39e   : > { %4401 = vpow2.f32 %v2057_v27  ;;  %v1940_v51 = vmax.f32 %v1938_v44, %v1939_v25  ;;  %v1956_v7 = vmax.f32 %v1954_v24, %v1955_v14  ;;  %v5242_v36 = vadd.f32 %v5178_v42, %v1825_v13 }
 0x39f   : > { %v1948_v63 = vrot.slane %v1947_v12, 4  ;;  %4403 = vpow2.f32 %v2051_v61  ;;  %v1959_v47 = vsel %vm1914_vm0, %v5239_v30, -inf }
 0x3a0   : > { %v2024_v58 = vsub.f32 %v5188_v37, %v1940_v51  ;;  %v2025_v17 = vsub.f32 %v5202_v0, %v1940_v51  ;;  %v2026_v38 = vsub.f32 %v5199_v29, %v1940_v51  ;;  %v1957_v11 = vsel %vm1914_vm0, %v5242_v36, -inf }
 0x3a1   : > { %v1949_v49 = vmax.f32 %v1947_v12, %v1948_v63  ;;  %v1958_v9 = vmax.f32 %v1956_v7, %v1957_v11  ;;  %v3832_v52 = vpop.f32.mrb[80].mxu0  ;;  %v2023_v16 = vsub.f32 %v5192_v26, %v1940_v51  ;;  %v5682_v26 = vmov 0.0  }
 0x3a2   : > { %v2061_v32 = vmul.f32 1.442695, %v2024_v58  ;;  %v2063_v41 = vmul.f32 1.442695, %v2025_v17  ;;  %v5253_v55 = vadd.f32 %v3832_v52, %v5178_v42  ;;  %v1835_v19 = vpop.f32.mrb[81].mxu0  ;;  %3862 = vmatprep.mubr.msk.f32.mxu1 %vm4547_vm1, %v5682_v26  ;;  %3974 = vmatprep.mubr.msk.f32.mxu0 %vm4547_vm1, %v5682_v26 }
 0x3a3   : > { %v1950_v37 = vrot.slane %v1949_v49, 2  ;;  %v1960_v0 = vmax.f32 %v1958_v9, %v1959_v47  ;;  %v5258_v4 = vadd.f32 %v5178_v42, %v1835_v19  ;;  %v2059_v10 = vmul.f32 1.442695, %v2023_v16 }
 0x3a4   : > { %4405 = vpow2.f32 %v2061_v32  ;;  %v1968_v29 = vsel %vm1914_vm0, %v5253_v55, -inf  ;;  %v2065_v14 = vmul.f32 1.442695, %v2026_v38 }
 0x3a5   : > { %v1951_v62 = vmax.f32 %v1949_v49, %v1950_v37  ;;  %v1961_v2 = vrot.slane %v1960_v0, 4  ;;  %v3835_v3 = vpop.f32.mrb[82].mxu0  ;;  %4407 = vpow2.f32 %v2063_v41  ;;  %v1967_v5 = vsel %vm1914_vm0, %v5258_v4, -inf }
 0x3a6   : > { %v5264_v18 = vpop.eup %4397  ;;  %v5269_v50 = vadd.f32 %v3835_v3, %v5178_v42  ;;  %v1845_v59 = vpop.f32.mrb[83].mxu0  ;;  %v1969_v27 = vmax.f32 %v1967_v5, %v1968_v29  ;;  %4409 = vpow2.f32 %v2059_v10 }
 0x3a7   : > { %v5271_v54 = vpop.eup %4399  ;;  %v1952_v31 = vrot.slane %v1951_v62, 1  ;;  %v1962_v15 = vmax.f32 %v1960_v0, %v1961_v2  ;;  %v5274_v44 = vadd.f32 %v5178_v42, %v1845_v59  ;;  %v2116_v24 = vsel %vm1914_vm0, %v5264_v18, 0.0 }
 0x3a8   : > { %v5276_v39 = vpop.eup %4401  ;;  %v1972_v13 = vsel %vm1914_vm0, %v5269_v50, -inf  ;;  %v2118_v41 = vsel %vm1914_vm0, %v5271_v54, 0.0  ;;  %4411 = vpow2.f32 %v2065_v14 }
 0x3a9   : > { %v5278_v61 = vpop.eup %4403  ;;  %v5280_v25 = vmax.f32 %v1951_v62, %v1952_v31  ;;  %v1963_v40 = vrot.slane %v1962_v15, 2  ;;  %v1970_v28 = vsel %vm1914_vm0, %v5274_v44, -inf  ;;  %v3838_v12 = vpop.f32.mrb[84].mxu0  ;;  %v2120_v62 = vsel %vm1914_vm0, %v5276_v39, 0.0 }
 0x3aa   : > { %v1971_v51 = vmax.f32 %v1969_v27, %v1970_v28  ;;  %v5289_v7 = vadd.f32 %v3838_v12, %v5178_v42  ;;  %v1855_v63 = vpop.f32.mrb[85].mxu0  ;;  %v2115_v58 = vsel %vm1914_vm0, %v5278_v61, 0.0 }
 0x3ab   : > { %v2028_v17 = vsub.f32 %v5209_v23, %v5280_v25  ;;  %v2029_v38 = vsub.f32 %v5219_v53, %v5280_v25  ;;  %v2030_v11 = vsub.f32 %v5222_v43, %v5280_v25  ;;  %v1964_v49 = vmax.f32 %v1962_v15, %v1963_v40 }
 0x3ac   : > { %v1973_v9 = vmax.f32 %v1971_v51, %v1972_v13  ;;  %v1981_v52 = vsel %vm1914_vm0, %v5289_v7, -inf  ;;  %v5302_v16 = vadd.f32 %v5178_v42, %v1855_v63  ;;  %v2117_v32 = vadd.f32 %v2116_v24, %v2115_v58 }
 0x3ad   : > { %v2027_v23 = vsub.f32 %v5212_v1, %v5280_v25  ;;  %v1965_v53 = vrot.slane %v1964_v49, 1  ;;  %v3841_v0 = vpop.f32.mrb[86].mxu0  ;;  %v2069_v3 = vmul.f32 1.442695, %v2028_v17  ;;  %v2071_v5 = vmul.f32 1.442695, %v2029_v38 }
 0x3ae   : > { %v5308_v47 = vpop.eup %4405  ;;  %v1974_v37 = vrot.slane %v1973_v9, 4  ;;  %v1980_v43 = vsel %vm1914_vm0, %v5302_v16, -inf  ;;  %v2119_v19 = vadd.f32 %v2118_v41, %v2117_v32  ;;  %v1865_v10 = vpop.f32.mrb[87].mxu0  ;;  %v5319_v15 = vadd.f32 %v3841_v0, %v5178_v42 }
 0x3af   : > { %v1982_v29 = vmax.f32 %v1980_v43, %v1981_v52  ;;  %v5314_v2 = vpop.eup %4407  ;;  %v5316_v59 = vmax.f32 %v1964_v49, %v1965_v53  ;;  %v5322_v27 = vadd.f32 %v5178_v42, %v1865_v10  ;;  %v2129_v14 = vsel %vm1914_vm0, %v5308_v47, 0.0 }
 0x3b0   : > { %v1975_v31 = vmax.f32 %v1973_v9, %v1974_v37  ;;  %v2121_v40 = vadd.f32 %v2120_v62, %v2119_v19  ;;  %v5326_v28 = vpop.eup %4409  ;;  %4413 = vpow2.f32 %v2069_v3  ;;  %v2131_v53 = vsel %vm1914_vm0, %v5314_v2, 0.0 }
 0x3b1   : > { %v2032_v12 = vsub.f32 %v5227_v56, %v5316_v59  ;;  %v2033_v24 = vsub.f32 %v5242_v36, %v5316_v59  ;;  %v2034_v13 = vsub.f32 %v5239_v30, %v5316_v59  ;;  %v1983_v58 = vsel %vm1914_vm0, %v5322_v27, -inf }
 0x3b2   : > { %v1976_v51 = vrot.slane %v1975_v31, 2  ;;  %v3844_v63 = vpop.f32.mrb[88].mxu0  ;;  %v2122_v49 = vrot.slane %v2121_v40, 4  ;;  %v2128_v9 = vsel %vm1914_vm0, %v5326_v28, 0.0  ;;  %v2073_v56 = vmul.f32 1.442695, %v2030_v11 }
 0x3b3   : > { %v5337_v17 = vadd.f32 %v3844_v63, %v5178_v42  ;;  %v1875_v38 = vpop.f32.mrb[89].mxu0  ;;  %v1984_v36 = vmax.f32 %v1982_v29, %v1983_v58  ;;  %v1985_v43 = vsel %vm1914_vm0, %v5319_v15, -inf  ;;  %v2130_v19 = vadd.f32 %v2129_v14, %v2128_v9 }
 0x3b4   : > { %v1977_v52 = vmax.f32 %v1975_v31, %v1976_v51  ;;  %v5344_v32 = vadd.f32 %v5178_v42, %v1875_v38  ;;  %v2123_v41 = vadd.f32 %v2122_v49, %v2121_v40  ;;  %4415 = vpow2.f32 %v2071_v5  ;;  %v5360_v51 = vpop.eup %4411 }
 0x3b5   : > { %v1994_v30 = vsel %vm1914_vm0, %v5337_v17, -inf  ;;  %v1986_v11 = vmax.f32 %v1984_v36, %v1985_v43  ;;  %4417 = vpow2.f32 %v2073_v56  ;;  %v2077_v63 = vmul.f32 1.442695, %v2032_v12 }
 0x3b6   : > { %v1978_v37 = vrot.slane %v1977_v52, 1  ;;  %v3847_v0 = vpop.f32.mrb[90].mxu0  ;;  %v1993_v29 = vsel %vm1914_vm0, %v5344_v32, -inf  ;;  %v2124_v5 = vrot.slane %v2123_v41, 2  ;;  %v2132_v58 = vadd.f32 %v2131_v53, %v2130_v19 }
 0x3b7   : > { %v5353_v10 = vadd.f32 %v3847_v0, %v5178_v42  ;;  %v1885_v62 = vpop.f32.mrb[91].mxu0  ;;  %v1995_v31 = vmax.f32 %v1993_v29, %v1994_v30  ;;  %v1987_v14 = vrot.slane %v1986_v11, 4  ;;  %v2079_v36 = vmul.f32 1.442695, %v2033_v24 }
 0x3b8   : > { %v5355_v3 = vmax.f32 %v1977_v52, %v1978_v37  ;;  %v5358_v40 = vadd.f32 %v5178_v42, %v1885_v62  ;;  %v2081_v43 = vmul.f32 1.442695, %v2034_v13  ;;  %4419 = vpow2.f32 %v2077_v63 }
 0x3b9   : > { %v1988_v30 = vmax.f32 %v1986_v11, %v1987_v14  ;;  %v2125_v11 = vadd.f32 %v2124_v5, %v2123_v41  ;;  %v2067_v14 = vmul.f32 1.442695, %v2027_v23  ;;  %4421 = vpow2.f32 %v2079_v36 }
 0x3ba   : > { %v2036_v38 = vsub.f32 %v5253_v55, %v5355_v3  ;;  %v2037_v49 = vsub.f32 %v5274_v44, %v5355_v3  ;;  %v2038_v9 = vsub.f32 %v5269_v50, %v5355_v3  ;;  %v1996_v56 = vsel %vm1914_vm0, %v5358_v40, -inf  ;;  %v3850_v52 = vpop.f32.mrb[92].mxu0  ;;  %v5382_v29 = vpop.eup %4413 }
 0x3bb   : > { %v1997_v37 = vmax.f32 %v1995_v31, %v1996_v56  ;;  %v5371_v12 = vadd.f32 %v3850_v52, %v5178_v42  ;;  %v1895_v53 = vpop.f32.mrb[93].mxu0  ;;  %v1998_v55 = vsel %vm1914_vm0, %v5353_v10, -inf  ;;  %v2133_v50 = vsel %vm1914_vm0, %v5360_v51, 0.0 }
 0x3bc   : > { %v5376_v44 = vadd.f32 %v5178_v42, %v1895_v53  ;;  %v1989_v0 = vrot.slane %v1988_v30, 2  ;;  %v2134_v31 = vadd.f32 %v2133_v50, %v2132_v58  ;;  %4423 = vpow2.f32 %v2081_v43 }
 0x3bd   : > { %v1999_v19 = vmax.f32 %v1997_v37, %v1998_v55  ;;  %v2007_v24 = vsel %vm1914_vm0, %v5371_v12, -inf  ;;  %v2126_v5 = vrot.slane %v2125_v11, 1  ;;  %4425 = vpow2.f32 %v2067_v14 }
 0x3be   : > { %v2006_v13 = vsel %vm1914_vm0, %v5376_v44, -inf  ;;  %v3853_v62 = vpop.f32.mrb[94].mxu0  ;;  %v1990_v56 = vmax.f32 %v1988_v30, %v1989_v0  ;;  %v5395_v55 = vpop.eup %4415  ;;  %v2135_v26 = vrot.slane %v2134_v31, 4  ;;  %v2085_v25 = vmul.f32 1.442695, %v2036_v38 }
 0x3bf   : > { %v2000_v52 = vrot.slane %v1999_v19, 4  ;;  %v2008_v37 = vmax.f32 %v2006_v13, %v2007_v24  ;;  %v1905_v53 = vpop.f32.mrb[95].mxu0  ;;  %v5390_v41 = vadd.f32 %v3853_v62, %v5178_v42  ;;  %v5397_v1 = vpop.eup %4417  ;;  %v2087_v23 = vmul.f32 1.442695, %v2037_v49 }
 0x3c0   : > { %v5393_v63 = vadd.f32 %v5178_v42, %v1905_v53  ;;  %v1991_v58 = vrot.slane %v1990_v56, 1  ;;  %v2127_v30 = vadd.f32 %v2126_v5, %v2125_v11  ;;  %v2136_v42 = vadd.f32 %v2135_v26, %v2134_v31 }
 0x3c1   : > { %v2001_v50 = vmax.f32 %v1999_v19, %v2000_v52  ;;  %v2089_v13 = vmul.f32 1.442695, %v2038_v9  ;;  %v2011_v62 = vsel %vm1914_vm0, %v5390_v41, -inf  ;;  %v2031_v19 = vsub.f32 %v5232_v20, %v5316_v59 }
 0x3c2   : > { %v2009_v36 = vsel %vm1914_vm0, %v5393_v63, -inf  ;;  %v1992_v43 = vmax.f32 %v1990_v56, %v1991_v58  ;;  %4427 = vrcp.f32 %v2127_v30  ;;  %v2137_v56 = vrot.slane %v2136_v42, 2  ;;  %v5410_v53 = vpop.eup %4419 }
 0x3c3   : > { %v2002_v0 = vrot.slane %v2001_v50, 2  ;;  %v2010_v24 = vmax.f32 %v2008_v37, %v2009_v36  ;;  %4429 = vpow2.f32 %v2085_v25  ;;  %v2075_v37 = vmul.f32 1.442695, %v2031_v19 }
 0x3c4   : > { %v2040_v14 = vsub.f32 %v5289_v7, %v1992_v43  ;;  %v2041_v38 = vsub.f32 %v5322_v27, %v1992_v43  ;;  %v2042_v49 = vsub.f32 %v5319_v15, %v1992_v43  ;;  %4431 = vpow2.f32 %v2087_v23  ;;  %v5412_v27 = vpop.eup %4421 }
 0x3c5   : > { %v2003_v52 = vmax.f32 %v2001_v50, %v2002_v0  ;;  %v2012_v11 = vmax.f32 %v2010_v24, %v2011_v62  ;;  %v2035_v31 = vsub.f32 %v5258_v4, %v5355_v3  ;;  %v2138_v7 = vadd.f32 %v2137_v56, %v2136_v42 }
 0x3c6   : > { %v2093_v26 = vmul.f32 1.442695, %v2040_v14  ;;  %v2095_v9 = vmul.f32 1.442695, %v2041_v38  ;;  %4433 = vpow2.f32 %v2075_v37  ;;  %v5414_v5 = vpop.eup %4423  ;;  %v2097_v23 = vmul.f32 1.442695, %v2042_v49 }
 0x3c7   : > { %v2004_v20 = vrot.slane %v2003_v52, 1  ;;  %v2013_v59 = vrot.slane %v2012_v11, 4  ;;  %4435 = vpow2.f32 %v2089_v13  ;;  %v2083_v15 = vmul.f32 1.442695, %v2035_v31  ;;  %v5416_v25 = vpop.eup %4425 }
 0x3c8   : > { %4437 = vpow2.f32 %v2093_v26  ;;  %v2139_v4 = vrot.slane %v2138_v7, 1  ;;  %v2039_v3 = vsub.f32 %v5302_v16, %v1992_v43  ;;  %v2141_v13 = vsel %vm1914_vm0, %v5416_v25, 0.0 }
 0x3c9   : > { %v2005_v58 = vmax.f32 %v2003_v52, %v2004_v20  ;;  %v2014_v50 = vmax.f32 %v2012_v11, %v2013_v59  ;;  %4439 = vpow2.f32 %v2095_v9  ;;  %v2142_v62 = vsel %vm1914_vm0, %v5382_v29, 0.0 }
 0x3ca   : > { %v2140_v42 = vadd.f32 %v2139_v4, %v2138_v7  ;;  %4441 = vpow2.f32 %v2083_v15  ;;  %v2091_v16 = vmul.f32 1.442695, %v2039_v3  ;;  %v2143_v56 = vadd.f32 %v2142_v62, %v2141_v13 }
 0x3cb   : > { %v2044_v36 = vsub.f32 %v5337_v17, %v2005_v58  ;;  %v2045_v30 = vsub.f32 %v5358_v40, %v2005_v58  ;;  %v2046_v0 = vsub.f32 %v5353_v10, %v2005_v58  ;;  %v2015_v24 = vrot.slane %v2014_v50, 2 }
 0x3cc   : > { %v4428_v19 = vpop.eup %4427  ;;  %4443 = vrcp.f32 %v2140_v42  ;;  %v2144_v26 = vsel %vm1914_vm0, %v5395_v55, 0.0  ;;  %v2159_v62 = vsel %vm1914_vm0, %v5414_v5, 0.0 }
 0x3cd   : > { %v2101_v14 = vmul.f32 1.442695, %v2044_v36  ;;  %v2103_v38 = vmul.f32 1.442695, %v2045_v30  ;;  %v2016_v49 = vmax.f32 %v2014_v50, %v2015_v24  ;;  %v2227_v17 = vmul.f32 %v4428_v19, %v5278_v61  ;;  %v5429_v43 = vpop.eup %4429 }
 0x3ce   : > { %v2228_v40 = vmul.f32 %v4428_v19, %v5264_v18  ;;  %v2229_v10 = vmul.f32 %v4428_v19, %v5271_v54  ;;  %4445 = vpow2.f32 %v2097_v23  ;;  %v2230_v11 = vmul.f32 %v4428_v19, %v5276_v39  ;;  %v5432_v37 = vpop.eup %4431 }
 0x3cf   : > { %v2017_v52 = vrot.slane %v2016_v49, 1  ;;  %4447 = vpow2.f32 %v2101_v14  ;;  %2259 = vxpose.xlu0.b32.start [1/4] (short) (narrow) %v2227_v17, 8  ;;  %v2146_v18 = vsel %vm1914_vm0, %v5397_v1, 0.0  ;;  %v2043_v61 = vsub.f32 %v5344_v32, %v2005_v58 }
 0x3d0   : > { %v5439_v54 = vpop.eup %4433  ;;  %4449 = vpow2.f32 %v2103_v38  ;;  %v2145_v31 = vadd.f32 %v2144_v26, %v2143_v56  ;;  %v2155_v39 = vsel %vm1914_vm0, %v5410_v53, 0.0  ;;  %v2105_v59 = vmul.f32 1.442695, %v2046_v0 }
 0x3d1   : > { %v2018_v9 = vmax.f32 %v2016_v49, %v2017_v52  ;;  %v5443_v20 = vpop.eup %4435  ;;  %v2154_v7 = vsel %vm1914_vm0, %v5439_v54, 0.0  ;;  %4451 = vpow2.f32 %v2091_v16  ;;  %v2099_v15 = vmul.f32 1.442695, %v2043_v61 }
 0x3d2   : > { %v5447_v50 = vpop.eup %4437  ;;  %v2147_v4 = vadd.f32 %v2146_v18, %v2145_v31  ;;  %v2157_v36 = vsel %vm1914_vm0, %v5412_v27, 0.0  ;;  %v2156_v30 = vadd.f32 %v2155_v39, %v2154_v7  ;;  %v2168_v42 = vsel %vm1914_vm0, %v5429_v43, 0.0 }
 0x3d3   : > { %v2048_v32 = vsub.f32 %v5371_v12, %v2018_v9  ;;  %v2049_v58 = vsub.f32 %v5393_v63, %v2018_v9  ;;  %v2050_v23 = vsub.f32 %v5390_v41, %v2018_v9  ;;  %v5452_v3 = vpop.eup %4439  ;;  %2260 = vxpose.xlu0.b32.cont [2/4] (short) (narrow) %v2228_v40, 8  ;;  %4453 = vpow2.f32 %v2099_v15 }
 0x3d4   : > { %v2047_v12 = vsub.f32 %v5376_v44, %v2018_v9  ;;  %v5459_v13 = vpop.eup %4441  ;;  %4455 = vpow2.f32 %v2105_v59  ;;  %v2148_v41 = vrot.slane %v2147_v4, 4  ;;  %v2158_v63 = vadd.f32 %v2157_v36, %v2156_v30 }
 0x3d5   : > { %v2109_v0 = vmul.f32 1.442695, %v2048_v32  ;;  %v2111_v24 = vmul.f32 1.442695, %v2049_v58  ;;  %v2170_v19 = vsel %vm1914_vm0, %v5432_v37, 0.0  ;;  %v2167_v14 = vsel %vm1914_vm0, %v5459_v13, 0.0 }
 0x3d6   : > { %v2107_v38 = vmul.f32 1.442695, %v2047_v12  ;;  %v4444_v49 = vpop.eup %4443  ;;  %v2113_v16 = vmul.f32 1.442695, %v2050_v23  ;;  %v2149_v44 = vadd.f32 %v2148_v41, %v2147_v4  ;;  %v2160_v17 = vadd.f32 %v2159_v62, %v2158_v63 }
 0x3d7   : > { %4457 = vpow2.f32 %v2109_v0  ;;  %2261 = vxpose.xlu0.b32.cont [3/4] (short) (narrow) %v2229_v10, 8  ;;  %v2169_v40 = vadd.f32 %v2168_v42, %v2167_v14  ;;  %v2231_v56 = vmul.f32 %v4444_v49, %v5326_v28  ;;  %v2232_v26 = vmul.f32 %v4444_v49, %v5308_v47 }
 0x3d8   : > { %v5467_v52 = vpop.eup %4445  ;;  %4459 = vpow2.f32 %v2111_v24  ;;  %v2233_v18 = vmul.f32 %v4444_v49, %v5314_v2  ;;  %v2150_v9 = vrot.slane %v2149_v44, 2  ;;  %v2234_v31 = vmul.f32 %v4444_v49, %v5360_v51 }
 0x3d9   : > { %v5472_v61 = vpop.eup %4447  ;;  %v2161_v39 = vrot.slane %v2160_v17, 4  ;;  %v2171_v59 = vadd.f32 %v2170_v19, %v2169_v40  ;;  %2365 = vxpose.xlu1.b32.start [1/4] (short) (narrow) %v2231_v56, 8  ;;  %v2172_v7 = vsel %vm1914_vm0, %v5443_v20, 0.0  ;;  %v2181_v28 = vsel %vm1914_vm0, %v5447_v50, 0.0 }
 0x3da   : > { %v5475_v10 = vpop.eup %4449  ;;  %4461 = vpow2.f32 %v2107_v38  ;;  %v2151_v2 = vadd.f32 %v2150_v9, %v2149_v44  ;;  %v2194_v58 = vsel %vm1914_vm0, %v5472_v61, 0.0  ;;  %v2183_v24 = vsel %vm1914_vm0, %v5452_v3, 0.0 }
 0x3db   : > { %v5481_v47 = vpop.eup %4451  ;;  %2262 = vxpose.xlu0.b32.end [4/4] (short) (narrow) %v2230_v11, 8  ;;  %v2162_v15 = vadd.f32 %v2161_v39, %v2160_v17  ;;  %v2173_v32 = vadd.f32 %v2172_v7, %v2171_v59  ;;  %4463 = vpow2.f32 %v2113_v16  ;;  %v2196_v14 = vsel %vm1914_vm0, %v5475_v10, 0.0 }
 0x3dc   : > { %v2180_v51 = vsel %vm1914_vm0, %v5481_v47, 0.0  ;;  %v2152_v4 = vrot.slane %v2151_v2, 1  ;;  %v2185_v38 = vsel %vm1914_vm0, %v5467_v52, 0.0 }
 0x3dd   : > { %v5487_v23 = vpop.eup %4453  ;;  %v2163_v36 = vrot.slane %v2162_v15, 2  ;;  %v2174_v30 = vrot.slane %v2173_v32, 4  ;;  %v2182_v0 = vadd.f32 %v2181_v28, %v2180_v51  ;;  %2366 = vxpose.xlu1.b32.cont [2/4] (short) (narrow) %v2232_v26, 8 }
 0x3de   : > { %v2193_v11 = vsel %vm1914_vm0, %v5487_v23, 0.0  ;;  %v5493_v42 = vpop.eup %4455  ;;  %v2153_v12 = vadd.f32 %v2152_v4, %v2151_v2 }
 0x3df   : > { %v2164_v41 = vadd.f32 %v2163_v36, %v2162_v15  ;;  %v2175_v63 = vadd.f32 %v2174_v30, %v2173_v32  ;;  %v2184_v62 = vadd.f32 %v2183_v24, %v2182_v0  ;;  %v2195_v49 = vadd.f32 %v2194_v58, %v2193_v11 }
 0x3e0   : > { %4465 = vrcp.f32 %v2153_v12  ;;  %v2198_v26 = vsel %vm1914_vm0, %v5493_v42, 0.0 }
 0x3e1   : > { %v5495_v19 = vpop.eup %4457  ;;  %v2165_v16 = vrot.slane %v2164_v41, 1  ;;  %v2176_v44 = vrot.slane %v2175_v63, 2  ;;  %v2186_v17 = vadd.f32 %v2185_v38, %v2184_v62  ;;  %2367 = vxpose.xlu1.b32.cont [3/4] (short) (narrow) %v2233_v18, 8  ;;  %v2197_v56 = vadd.f32 %v2196_v14, %v2195_v49 }
 0x3e2   : > { %v5501_v40 = vpop.eup %4459  ;;  %v2207_v7 = vsel %vm1914_vm0, %v5495_v19, 0.0 }
 0x3e3   : > { %v2166_v9 = vadd.f32 %v2165_v16, %v2164_v41  ;;  %v2177_v39 = vadd.f32 %v2176_v44, %v2175_v63  ;;  %v2187_v59 = vrot.slane %v2186_v17, 4  ;;  %v2199_v2 = vadd.f32 %v2198_v26, %v2197_v56 }
 0x3e4   : > { %v5507_v28 = vpop.eup %4461  ;;  %v2209_v36 = vsel %vm1914_vm0, %v5501_v40, 0.0 }
 0x3e5   : > { %4467 = vrcp.f32 %v2166_v9  ;;  %v2178_v15 = vrot.slane %v2177_v39, 1  ;;  %v2188_v32 = vadd.f32 %v2187_v59, %v2186_v17  ;;  %v2206_v51 = vsel %vm1914_vm0, %v5507_v28, 0.0  ;;  %v5511_v18 = vpop.eup %4463  ;;  %2368 = vxpose.xlu1.b32.end [4/4] (short) (narrow) %v2234_v31, 8 }
 0x3e6   : > { %v2200_v58 = vrot.slane %v2199_v2, 4  ;;  %v2208_v4 = vadd.f32 %v2207_v7, %v2206_v51  ;;  %v2211_v41 = vsel %vm1914_vm0, %v5511_v18, 0.0 }
 0x3e7   : > { %v2179_v30 = vadd.f32 %v2178_v15, %v2177_v39  ;;  %v2189_v0 = vrot.slane %v2188_v32, 2 }
 0x3e8   : > { %v2201_v24 = vadd.f32 %v2200_v58, %v2199_v2  ;;  %v2210_v11 = vadd.f32 %v2209_v36, %v2208_v4 }
 0x3e9   : > { %4469 = vrcp.f32 %v2179_v30  ;;  %v2190_v12 = vadd.f32 %v2189_v0, %v2188_v32 }
 0x3ea   : > { %v2202_v63 = vrot.slane %v2201_v24, 2  ;;  %v2212_v62 = vadd.f32 %v2211_v41, %v2210_v11  ;;  %v4466_v14 = vpop.eup %4465 }
 0x3eb   : > { %v2191_v38 = vrot.slane %v2190_v12, 1  ;;  %v2235_v31 = vmul.f32 %v4466_v14, %v5416_v25  ;;  %v2236_v49 = vmul.f32 %v4466_v14, %v5382_v29  ;;  %v2237_v16 = vmul.f32 %v4466_v14, %v5395_v55 }
 0x3ec   : > { %v2238_v44 = vmul.f32 %v4466_v14, %v5397_v1  ;;  %v2203_v56 = vadd.f32 %v2202_v63, %v2201_v24  ;;  %v2213_v26 = vrot.slane %v2212_v62, 4  ;;  %v3106_v63 = vld [vmem:[%s5675_s9 + $0x30] sm:$0xff] }
 0x3ed   : > { %v2192_v17 = vadd.f32 %v2191_v38, %v2190_v12  ;;  %2470 = vxpose.xlu0.b32.start [1/4] (short) (narrow) %v2235_v31, 8  ;;  %v3108_v38 = vld [vmem:[%s5675_s9 + $0x40] sm:$0xff]  ;;  %v3109_v31 = vld [vmem:[%s5675_s9 + $0x48] sm:$0xff] }
 0x3ee   : > { %v2204_v39 = vrot.slane %v2203_v56, 1  ;;  %v2214_v59 = vadd.f32 %v2213_v26, %v2212_v62  ;;  %v3107_v62 = vld [vmem:[%s5675_s9 + $0x38] sm:$0xff]  ;;  %v3113_v26 = vld [vmem:[%s5675_s9 + $0x68] sm:$0xff] }
 0x3ef   : > { %v4468_v9 = vpop.eup %4467  ;;  %4471 = vrcp.f32 %v2192_v17  ;;  %v4067_v14 = vpack.c.bf16 %v3107_v62, %v3106_v63 }
 0x3f0   : > { %v2239_v7 = vmul.f32 %v4468_v9, %v5439_v54  ;;  %v2240_v2 = vmul.f32 %v4468_v9, %v5410_v53  ;;  %v2241_v25 = vmul.f32 %v4468_v9, %v5412_v27  ;;  %v2242_v29 = vmul.f32 %v4468_v9, %v5414_v5 }
 0x3f1   : > { %v2205_v15 = vadd.f32 %v2204_v39, %v2203_v56  ;;  %v2215_v55 = vrot.slane %v2214_v59, 2  ;;  %2471 = vxpose.xlu0.b32.cont [2/4] (short) (narrow) %v2236_v49, 8  ;;  %v4070_v49 = vpack.c.bf16 %v3109_v31, %v3108_v38  ;;  %v3112_v56 = vld [vmem:[%s5675_s9 + $0x60] sm:$0xff]  ;;  %v3114_v39 = vld [vmem:[%s5675_s9 + $0x70] sm:$0xff] }
 0x3f2   : > { %2575 = vxpose.xlu1.b32.start [1/4] (short) (narrow) %v2239_v7, 8  ;;  %v4076_v9 = vpack.c.bf16 %v3113_v26, %v3112_v56 }
 0x3f3   : > { %v4470_v1 = vpop.eup %4469  ;;  %4473 = vrcp.f32 %v2205_v15  ;;  %v2216_v32 = vadd.f32 %v2215_v55, %v2214_v59  ;;  %v3115_v59 = vld [vmem:[%s5675_s9 + $0x78] sm:$0xff] }
 0x3f4   : > { %v2243_v51 = vmul.f32 %v4470_v1, %v5459_v13  ;;  %v2244_v58 = vmul.f32 %v4470_v1, %v5429_v43  ;;  %v2245_v4 = vmul.f32 %v4470_v1, %v5432_v37  ;;  %v2246_v54 = vmul.f32 %v4470_v1, %v5443_v20 }
 0x3f5   : > { %v2217_v53 = vrot.slane %v2216_v32, 1  ;;  %2472 = vxpose.xlu0.b32.cont [3/4] (short) (narrow) %v2237_v16, 8  ;;  %v3110_v16 = vld [vmem:[%s5675_s9 + $0x50] sm:$0xff]  ;;  %v4079_v7 = vpack.c.bf16 %v3115_v59, %v3114_v39 }
 0x3f6   : > { %2576 = vxpose.xlu1.b32.cont [2/4] (short) (narrow) %v2240_v2, 8 }
 0x3f7   : > { %v2218_v27 = vadd.f32 %v2217_v53, %v2216_v32 }
 0x3f9   : > { %v4472_v5 = vpop.eup %4471  ;;  %4475 = vrcp.f32 %v2218_v27  ;;  %2473 = vxpose.xlu0.b32.end [4/4] (short) (narrow) %v2238_v44, 8  ;;  %v3111_v44 = vld [vmem:[%s5675_s9 + $0x58] sm:$0xff] }
 0x3fa   : > { %2577 = vxpose.xlu1.b32.cont [3/4] (short) (narrow) %v2241_v25, 8  ;;  %v2247_v36 = vmul.f32 %v4472_v5, %v5481_v47  ;;  %v2248_v30 = vmul.f32 %v4472_v5, %v5447_v50  ;;  %v2249_v13 = vmul.f32 %v4472_v5, %v5452_v3  ;;  %v2250_v43 = vmul.f32 %v4472_v5, %v5467_v52 }
 0x3fb   : > { %v4073_v17 = vpack.c.bf16 %v3111_v44, %v3110_v16 }
 0x3fd   : > { %v4474_v0 = vpop.eup %4473  ;;  %2680 = vxpose.xlu0.b32.start [1/4] (short) (narrow) %v2243_v51, 8 }
 0x3fe   : > { %2578 = vxpose.xlu1.b32.end [4/4] (short) (narrow) %v2242_v29, 8  ;;  %v2251_v37 = vmul.f32 %v4474_v0, %v5487_v23  ;;  %v2252_v20 = vmul.f32 %v4474_v0, %v5472_v61  ;;  %v2253_v24 = vmul.f32 %v4474_v0, %v5475_v10  ;;  %v2254_v11 = vmul.f32 %v4474_v0, %v5493_v42  ;;  %v3100_v61 = vld [vmem:[%s5675_s9] sm:$0xff]  ;;  %v3101_v10 = vld [vmem:[%s5675_s9 + $0x8] sm:$0xff] }
 0x3ff   : > { %v4058_v23 = vpack.c.bf16 %v3101_v10, %v3100_v61  ;;  %v5689_v42 = vmov 0.0|0.0  }
 0x401   : > { %2681 = vxpose.xlu0.b32.cont [2/4] (short) (narrow) %v2244_v58, 8  ;;  %4059 = vmatpush3.bf16.msra.mxu0 %v4058_v23  ;;  %v3408_v23 = vld [vmem:[%s5676_s10] ss:$0 sm:$0xff] }
 0x402   : > { %2785 = vxpose.xlu1.b32.start [1/4] (short) (narrow) %v2247_v36, 8  ;;  %4060 = vmatprep.subr.bf16.mxu0 %v5689_v42 }
 0x403   : > { %v4476_v47 = vpop.eup %4475 }
 0x404   : > { %v2255_v50 = vmul.f32 %v4476_v47, %v5507_v28  ;;  %v2256_v3 = vmul.f32 %v4476_v47, %v5495_v19  ;;  %v2257_v52 = vmul.f32 %v4476_v47, %v5501_v40  ;;  %v2258_v12 = vmul.f32 %v4476_v47, %v5511_v18  ;;  %v3105_v18 = vld [vmem:[%s5675_s9 + $0x28] sm:$0xff] }
 0x405   : > { %2682 = vxpose.xlu0.b32.cont [3/4] (short) (narrow) %v2245_v4, 8  ;;  %v5690_v40 = vmov 0.0  }
 0x406   : > { %2786 = vxpose.xlu1.b32.cont [2/4] (short) (narrow) %v2248_v30, 8 }
 0x409   : > { %2683 = vxpose.xlu0.b32.end [4/4] (short) (narrow) %v2246_v54, 8 }
 0x40a   : > { %2787 = vxpose.xlu1.b32.cont [3/4] (short) (narrow) %v2249_v13, 8 }
 0x40d   : > { %2890 = vxpose.xlu0.b32.start [1/4] (short) (narrow) %v2251_v37, 8 }
 0x40e   : > { %2788 = vxpose.xlu1.b32.end [4/4] (short) (narrow) %v2250_v43, 8 }
 0x411   : > { %2891 = vxpose.xlu0.b32.cont [2/4] (short) (narrow) %v2252_v20, 8 }
 0x412   : > { %2995 = vxpose.xlu1.b32.start [1/4] (short) (narrow) %v2255_v50, 8 }
 0x415   : > { %2892 = vxpose.xlu0.b32.cont [3/4] (short) (narrow) %v2253_v24, 8 }
 0x416   : > { %2996 = vxpose.xlu1.b32.cont [2/4] (short) (narrow) %v2256_v3, 8 }
 0x419   : > { %2893 = vxpose.xlu0.b32.end [4/4] (short) (narrow) %v2254_v11, 8 }
 0x41a   : > { %2997 = vxpose.xlu1.b32.cont [3/4] (short) (narrow) %v2257_v52, 8 }
 0x41e   : > { %2998 = vxpose.xlu1.b32.end [4/4] (short) (narrow) %v2258_v12, 8 }
 0x44f   : > { %v2275_v19 = vpop.trf.xlu0 }
 0x450   : > { %3863 = vmatmul.mubr.msk.f32.vlgmr.msra.gmra.mrb[64].mxu1 %vm2291_vm2, %v2275_v19 }
 0x451   : > { %4017 = vmatpush3.bf16.msra.mxu1 %v4834_v33  ;;  %3873 = vmatprep.mubr.msk.f32.mxu1 %vm4547_vm1, %v5690_v40 }
 0x452   : > { %4018 = vmatprep.subr.bf16.mxu1 %v5689_v42 }
 0x455   : > { %4020 = vmatpush3.bf16.msra.mxu1 %v4845_v46 }
 0x456   : > { %4021 = vmatprep.subr.bf16.mxu1 %v5689_v42 }
 0x459   : > { %v2381_v28 = vpop.trf.xlu1 }
 0x45a   : > { %3874 = vmatmul.mubr.msk.f32.vlgmr.msra.gmra.mrb[66].mxu1 %vm2291_vm2, %v2381_v28 }
 0x45b   : > { %4023 = vmatpush3.bf16.msra.mxu1 %v4856_v60  ;;  %3884 = vmatprep.mubr.msk.f32.mxu1 %vm4547_vm1, %v5690_v40 }
 0x45c   : > { %4024 = vmatprep.subr.bf16.mxu1 %v5689_v42 }
 0x45f   : > { %4026 = vmatpush3.bf16.msra.mxu1 %v4864_v8 }
 0x460   : > { %4027 = vmatprep.subr.bf16.mxu1 %v5689_v42 }
 0x46d   : > { %v2486_v33 = vpop.trf.xlu0 }
 0x46e   : > { %3885 = vmatmul.mubr.msk.f32.vlgmr.msra.gmra.mrb[68].mxu1 %vm2291_vm2, %v2486_v33 }
 0x46f   : > { %4029 = vmatpush3.bf16.msra.mxu1 %v4870_v22  ;;  %3895 = vmatprep.mubr.msk.f32.mxu1 %vm4547_vm1, %v5690_v40 }
 0x470   : > { %4030 = vmatprep.subr.bf16.mxu1 %v5689_v42 }
 0x472   : > { %v2591_v46 = vpop.trf.xlu1 }
 0x473   : > { %4032 = vmatpush3.bf16.msra.mxu1 %v4875_v34  ;;  %v5691_v34 = vld [vmem:[#allocation6_spill] sm:$0xff] }
 0x474   : > { %4033 = vmatprep.subr.bf16.mxu1 %v5689_v42 }
 0x476   : > { %3896 = vmatmul.mubr.msk.f32.vlgmr.msra.gmra.mrb[70].mxu1 %vm2291_vm2, %v2591_v46 }
 0x477   : > { %4035 = vmatpush3.bf16.msra.mxu1 %v4880_v45  ;;  %3906 = vmatprep.mubr.msk.f32.mxu1 %vm4547_vm1, %v5690_v40  ;;  %v5692_v45 = vld [vmem:[#allocation7_spill] sm:$0xff] }
 0x478   : > { %4036 = vmatprep.subr.bf16.mxu1 %v5689_v42 }
 0x47b   : > { %4038 = vmatpush3.bf16.msra.mxu1 %v4885_v57 }
 0x47c   : > { %4039 = vmatprep.subr.bf16.mxu1 %v5689_v42 }
 0x47d   : > { %v2696_v60 = vpop.trf.xlu0 }
 0x47e   : > { %3907 = vmatmul.mubr.msk.f32.vlgmr.msra.gmra.mrb[72].mxu1 %vm2291_vm2, %v2696_v60 }
 0x47f   : > { %4041 = vmatpush3.bf16.msra.mxu1 %v4890_v6  ;;  %3917 = vmatprep.mubr.msk.f32.mxu1 %vm4547_vm1, %v5690_v40  ;;  %v3102_v6 = vld [vmem:[%s5675_s9 + $0x10] sm:$0xff] }
 0x480   : > { %4042 = vmatprep.subr.bf16.mxu1 %v5689_v42 }
 0x482   : > { %v2801_v8 = vpop.trf.xlu1 }
 0x483   : > { %4044 = vmatpush3.bf16.msra.mxu1 %v4895_v21  ;;  %v3103_v21 = vld [vmem:[%s5675_s9 + $0x18] sm:$0xff] }
 0x484   : > { %4045 = vmatprep.subr.bf16.mxu1 %v5689_v42 }
 0x486   : > { %3918 = vmatmul.mubr.msk.f32.vlgmr.msra.gmra.mrb[74].mxu1 %vm2291_vm2, %v2801_v8 }
 0x487   : > { %4047 = vmatpush3.bf16.msra.mxu1 %v4900_v35  ;;  %3928 = vmatprep.mubr.msk.f32.mxu1 %vm4547_vm1, %v5690_v40  ;;  %v4061_v35 = vpack.c.bf16 %v3103_v21, %v3102_v6 }
 0x488   : > { %4048 = vmatprep.subr.bf16.mxu1 %v5689_v42 }
 0x489   : > { %4062 = vmatpush3.bf16.msra.mxu0 %v4061_v35 }
 0x48a   : > { %4063 = vmatprep.subr.bf16.mxu0 %v5689_v42 }
 0x48b   : > { %4050 = vmatpush3.bf16.msra.mxu1 %v4905_v48  ;;  %v3104_v48 = vld [vmem:[%s5675_s9 + $0x20] sm:$0xff] }
 0x48c   : > { %4051 = vmatprep.subr.bf16.mxu1 %v5689_v42  ;;  %v4064_v41 = vpack.c.bf16 %v3105_v18, %v3104_v48 }
 0x48d   : > { %v2906_v22 = vpop.trf.xlu0 }
 0x48e   : > { %3929 = vmatmul.mubr.msk.f32.vlgmr.msra.gmra.mrb[76].mxu1 %vm2291_vm2, %v2906_v22  ;;  %4065 = vmatpush3.bf16.msra.mxu0 %v4064_v41 }
 0x48f   : > { %4053 = vmatpush3.bf16.msra.mxu1 %v5691_v34  ;;  %3939 = vmatprep.mubr.msk.f32.mxu1 %vm4547_vm1, %v5690_v40 }
 0x490   : > { %4054 = vmatprep.subr.bf16.mxu1 %v5689_v42  ;;  %4066 = vmatprep.subr.bf16.mxu0 %v5689_v42 }
 0x492   : > { %v3011_v57 = vpop.trf.xlu1  ;;  %4068 = vmatpush3.bf16.msra.mxu0 %v4067_v14 }
 0x493   : > { %4056 = vmatpush3.bf16.msra.mxu1 %v5692_v45  ;;  %4069 = vmatprep.subr.bf16.mxu0 %v5689_v42 }
 0x496   : > { %3940 = vmatmul.mubr.msk.f32.vlgmr.msra.gmra.mrb[78].mxu1 %vm2291_vm2, %v3011_v57  ;;  %4071 = vmatpush3.bf16.msra.mxu0 %v4070_v49 }
 0x497   : > { %4072 = vmatprep.subr.bf16.mxu0 %v5689_v42 }
 0x49a   : > { %4074 = vmatpush3.bf16.msra.mxu0 %v4073_v17 }
 0x49b   : > { %4075 = vmatprep.subr.bf16.mxu0 %v5689_v42 }
 0x49e   : > { %4077 = vmatpush3.bf16.msra.mxu0 %v4076_v9 }
 0x49f   : > { %4078 = vmatprep.subr.bf16.mxu0 %v5689_v42 }
 0x4a2   : > { %4080 = vmatpush3.bf16.msra.mxu0 %v4079_v7 }
 0x523   : > { %v2361_v2 = vpop.f32.mrb[64].mxu1 }
 0x524   : > { %v3864_v25 = vpop.f32.mrb[65].mxu1 }
 0x52d   : > { %v2466_v29 = vpop.f32.mrb[66].mxu1 }
 0x52e   : > { %v3131_v15 = vrot.slane %v2466_v29, 7  ;;  %v3875_v55 = vpop.f32.mrb[67].mxu1 }
 0x530   : > { %v3133_v1 = vsel %vm3132_vm3, %v3131_v15, %v2361_v2 }
 0x541   : > { %v2571_v32 = vpop.f32.mrb[68].mxu1 }
 0x542   : > { %v3134_v51 = vrot.slane %v2571_v32, 6  ;;  %v3886_v58 = vpop.f32.mrb[69].mxu1 }
 0x544   : > { %v3136_v4 = vsel %vm3135_vm4, %v3134_v51, %v3133_v1 }
 0x549   : > { %v2676_v54 = vpop.f32.mrb[70].mxu1 }
 0x54a   : > { %v3137_v53 = vrot.slane %v2676_v54, 5  ;;  %v3897_v27 = vpop.f32.mrb[71].mxu1 }
 0x54c   : > { %v3139_v5 = vsel %vm3138_vm5, %v3137_v53, %v3136_v4 }
 0x551   : > { %v2781_v36 = vpop.f32.mrb[72].mxu1 }
 0x552   : > { %v3140_v30 = vrot.slane %v2781_v36, 4  ;;  %v3908_v13 = vpop.f32.mrb[73].mxu1 }
 0x554   : > { %v3142_v43 = vsel %vm3141_vm6, %v3140_v30, %v3139_v5 }
 0x559   : > { %v2886_v0 = vpop.f32.mrb[74].mxu1 }
 0x55a   : > { %v3143_v37 = vrot.slane %v2886_v0, 3  ;;  %v3919_v20 = vpop.f32.mrb[75].mxu1 }
 0x55c   : > { %v3145_v24 = vsel %vm3144_vm7, %v3143_v37, %v3142_v43 }
 0x561   : > { %v2991_v11 = vpop.f32.mrb[76].mxu1 }
 0x562   : > { %v3146_v47 = vrot.slane %v2991_v11, 2  ;;  %v3930_v50 = vpop.f32.mrb[77].mxu1 }
 0x564   : > { %v3148_v3 = vsel %vm3147_vm8, %v3146_v47, %v3145_v24 }
 0x569   : > { %v3096_v52 = vpop.f32.mrb[78].mxu1 }
 0x56a   : > { %v3149_v12 = vrot.slane %v3096_v52, 1  ;;  %v3941_v61 = vpop.f32.mrb[79].mxu1 }
 0x56c   : > { %v3151_v10 = vsel %vm3150_vm9, %v3149_v12, %v3148_v3 }
 0x56d   : > { %3975 = vmatmul.mubr.f32.vlgmr.msra.gmra.mrb[96].mxu0 %v3151_v10 }
 0x640   : > { %v3219_v42 = vpop.f32.mrb[96].mxu0 }
 0x641   : > { %v3220_v19 = vadd.f32 %v3408_v23, %v3219_v42  ;;  %v3976_v40 = vpop.f32.mrb[97].mxu0 }
 0x643   : > { %3224 = vst.msk [vmem:[%s408_s24] sm:$0xff] %vm3223_vm10, %v3220_v19 }
 0x644 PF: > { %p23_p8 = scmp.ge.s32.totalorder %s4634_s23, 4   ;;  %s5693_s19 = smov %s4533_s20 }
 0x645   : > { %s5694_s20 = smov %s4537_s21  ;;  %s5695_s21 = smov %s4644_s26 }
 0x646   : > { %s5696_s22 = smov %s4634_s23  ;;  %25 = sbr.rel (!%p23_p8) target bundleno = 6 (0x6), region = 104 }
 0x64d   :  { %3244 = vsyncpa [#allocation4], 1 }
 0x64e   :  { %3246 = vsyncpa [#allocation4 + $0x1], 1 }

</bundles_post_ra>
